<compile_context>
chip_gen: v7x
topology: tpu7x:2x2x1
jax: 0.10.0
libtpu: 0.0.40
codegen_flags: <defaults>
</compile_context>

<pallas_src>
import math

import jax
import jax.numpy as jnp
from jax.experimental import pallas as pl
from jax.experimental.pallas import tpu as pltpu

LANE = 128
_EPS = 1e-5
_VMEM_LIMIT = 48 * 1024 * 1024  # > 32 MiB scoped default, < v7x 64 MiB physical


def _round_up(x, m):
    return (x + m - 1) // m * m


# ----------------------------- Pallas kernels ------------------------------ #

def _make_conv_kernel(H, W, Cip, Cop, apply_input_bn_relu):
    """3x3 SAME conv as 9 accumulated MXU matmuls over a VMEM halo tile,
    optional fused input-BN+ReLU prologue, fused per-channel sum / sum-of-squares
    epilogue (partial BN stats of the raw conv output)."""

    def conv_body(x, w_ref, y_ref, sum_ref, sq_ref, xpad_ref, acc_ref):
        # x: (H, W, Cip)  w_ref: (9*Cip, Cop)  y_ref: (1, H, W, Cop)
        # sum/sq_ref: (1, 1, Cop)  xpad_ref: (H+2, W+2, Cip)  acc_ref: (H*W, Cop)

        # 1-pixel zero halo built in VMEM (no extra HBM copy of the activation).
        xpad_ref[...] = jnp.zeros_like(xpad_ref)
        xpad_ref[1:H + 1, 1:W + 1, :] = x

        # 9 shifted-window matmuls, accumulated in fp32.  Each tap is a
        # lane-dense (H*W, Cip) x (Cip, Cop) MXU matmul (K = Cip = 128-aligned).
        for idx in range(9):
            kh, kw = idx // 3, idx % 3
            lhs = xpad_ref[kh:kh + H, kw:kw + W, :].reshape(H * W, Cip)
            part = jnp.dot(lhs, w_ref[idx * Cip:(idx + 1) * Cip, :],
                           preferred_element_type=jnp.float32)
            if idx == 0:
                acc_ref[...] = part
            else:
                acc_ref[...] += part

        y = acc_ref[...]                                   # (H*W, Cop)
        y_ref[...] = y.reshape(1, H, W, Cop)

        # Fused per-channel partial BN statistics of this conv's raw output.
        sum_ref[...] = jnp.sum(y, axis=0).reshape(1, 1, Cop)
        sq_ref[...] = jnp.sum(y * y, axis=0).reshape(1, 1, Cop)

    if apply_input_bn_relu:
        def kernel(x_ref, w_ref, s_ref, t_ref,       # inputs
                   y_ref, sum_ref, sq_ref,            # outputs
                   xpad_ref, acc_ref):                # VMEM scratch
            # BN-apply + ReLU of the previous layer, fused into this prologue.
            x = jnp.maximum(x_ref[0] * s_ref[...] + t_ref[...], 0.0)
            conv_body(x, w_ref, y_ref, sum_ref, sq_ref, xpad_ref, acc_ref)
    else:
        def kernel(x_ref, w_ref,
                   y_ref, sum_ref, sq_ref,
                   xpad_ref, acc_ref):
            conv_body(x_ref[0], w_ref, y_ref, sum_ref, sq_ref, xpad_ref, acc_ref)

    return kernel


def _bn_relu_apply_kernel(y_ref, s_ref, t_ref, o_ref):
    # y_ref/o_ref: (TM, C);  s_ref/t_ref: (1, C)  -- lane-dense elementwise.
    o_ref[...] = jnp.maximum(y_ref[...] * s_ref[...] + t_ref[...], 0.0)


# ------------------------------- Wrappers ----------------------------------- #

def conv3x3_bn_stats(x, w_packed, scale_in=None, shift_in=None):
    """x: (N, H, W, Cin_pad) NHWC, channel-padded to a multiple of 128.
    If scale_in/shift_in are given, applies y = relu(x*scale + shift) before the
    conv (fused BN+ReLU prologue).  Returns (conv_out, per-batch channel sums,
    per-batch channel sums-of-squares) of the *raw* conv output."""
    N, H, W, Cip = x.shape
    K, Cop = w_packed.shape
    apply_bn = scale_in is not None
    kernel = _make_conv_kernel(H, W, Cip, Cop, apply_bn)

    in_specs = [
        pl.BlockSpec((1, H, W, Cip), lambda n: (n, 0, 0, 0)),
        pl.BlockSpec((K, Cop), lambda n: (0, 0)),
    ]
    args = [x, w_packed]
    if apply_bn:
        in_specs += [
            pl.BlockSpec((1, Cip), lambda n: (0, 0)),
            pl.BlockSpec((1, Cip), lambda n: (0, 0)),
        ]
        args += [scale_in.reshape(1, Cip), shift_in.reshape(1, Cip)]

    # TODO(synk): for large spatial sizes (v7x 64 MiB VMEM) tile H with a
    # 1-row halo per block instead of one full image per grid step.
    return pl.pallas_call(
        kernel,
        out_shape=(
            jax.ShapeDtypeStruct((N, H, W, Cop), jnp.float32),
            jax.ShapeDtypeStruct((N, 1, Cop), jnp.float32),
            jax.ShapeDtypeStruct((N, 1, Cop), jnp.float32),
        ),
        grid=(N,),
        in_specs=in_specs,
        out_specs=(
            pl.BlockSpec((1, H, W, Cop), lambda n: (n, 0, 0, 0)),
            pl.BlockSpec((1, 1, Cop), lambda n: (n, 0, 0)),
            pl.BlockSpec((1, 1, Cop), lambda n: (n, 0, 0)),
        ),
        scratch_shapes=[
            pltpu.VMEM((H + 2, W + 2, Cip), jnp.float32),   # halo-padded tile
            pltpu.VMEM((H * W, Cop), jnp.float32),          # matmul accumulator
        ],
        compiler_params=pltpu.CompilerParams(
            dimension_semantics=("parallel",),
            vmem_limit_bytes=_VMEM_LIMIT),
    )(*args)


def bn_relu_apply(y, scale, shift):
    """Final standalone BN-apply + ReLU, tiled lane-dense over (rows, C_pad)."""
    N, H, W, C = y.shape
    M = N * H * W
    y2 = y.reshape(M, C)
    tm = min(256, M)
    out = pl.pallas_call(
        _bn_relu_apply_kernel,
        out_shape=jax.ShapeDtypeStruct((M, C), jnp.float32),
        grid=(pl.cdiv(M, tm),),
        in_specs=[
            pl.BlockSpec((tm, C), lambda i: (i, 0)),
            pl.BlockSpec((1, C), lambda i: (0, 0)),
            pl.BlockSpec((1, C), lambda i: (0, 0)),
        ],
        out_specs=pl.BlockSpec((tm, C), lambda i: (i, 0)),
        compiler_params=pltpu.CompilerParams(
            dimension_semantics=("parallel",),
            vmem_limit_bytes=_VMEM_LIMIT),
    )(y2, scale.reshape(1, C), shift.reshape(1, C))
    return out.reshape(N, H, W, C)


def _bn_affine(psum, psq, gamma, beta, count):
    """Per-channel BN scale/shift from fused partial sums (tiny host-side math).
    Padded channels are all-zero -> var clamped to 0, output stays 0."""
    s = jnp.sum(psum, axis=0).reshape(-1)
    q = jnp.sum(psq, axis=0).reshape(-1)
    mean = s / count
    var = jnp.maximum(q / count - mean * mean, 0.0)    # biased var (train-mode BN)
    scale = gamma * jax.lax.rsqrt(var + _EPS)
    shift = beta - mean * scale
    return scale, shift


class DoubleConvPallas:
    """Equivalent of the PyTorch DoubleConv module (training-mode BN)."""

    def __init__(self, in_channels, out_channels, mid_channels=None, *, key):
        if not mid_channels:
            mid_channels = out_channels
        mid_channels = max(1, mid_channels)
        self.cin, self.cmid, self.cout = in_channels, mid_channels, out_channels
        self.cin_p = _round_up(in_channels, LANE)
        self.cmid_p = _round_up(mid_channels, LANE)
        self.cout_p = _round_up(out_channels, LANE)

        k1, k2 = jax.random.split(key, 2)
        # Conv weights in HWIO (PyTorch stores OIHW, bias=False); deterministic
        # init mimicking PyTorch's kaiming-uniform bound.
        bound1 = 1.0 / math.sqrt(in_channels * 9)
        self.w1 = jax.random.uniform(
            k1, (3, 3, in_channels, mid_channels), jnp.float32, -bound1, bound1)
        bound2 = 1.0 / math.sqrt(mid_channels * 9)
        self.w2 = jax.random.uniform(
            k2, (3, 3, mid_channels, out_channels), jnp.float32, -bound2, bound2)

        # BatchNorm affine params (PyTorch init: weight=1, bias=0).
        self.gamma1 = jnp.ones((mid_channels,), jnp.float32)
        self.beta1 = jnp.zeros((mid_channels,), jnp.float32)
        self.gamma2 = jnp.ones((out_channels,), jnp.float32)
        self.beta2 = jnp.zeros((out_channels,), jnp.float32)

        # Lane-padded, matmul-packed weights: (9 * Cin_pad, Cout_pad).
        self.w1p = self._pack(self.w1, self.cin_p, self.cmid_p)
        self.w2p = self._pack(self.w2, self.cmid_p, self.cout_p)
        self.gamma1p = self._pad_vec(self.gamma1, self.cmid_p, 1.0)
        self.beta1p = self._pad_vec(self.beta1, self.cmid_p, 0.0)
        self.gamma2p = self._pad_vec(self.gamma2, self.cout_p, 1.0)
        self.beta2p = self._pad_vec(self.beta2, self.cout_p, 0.0)

    @staticmethod
    def _pack(w_hwio, cin_p, cout_p):
        kh, kw, cin, cout = w_hwio.shape
        wp = jnp.zeros((kh, kw, cin_p, cout_p), jnp.float32)
        wp = wp.at[:, :, :cin, :cout].set(w_hwio)
        return wp.reshape(kh * kw * cin_p, cout_p)

    @staticmethod
    def _pad_vec(v, c_p, fill):
        return jnp.full((c_p,), fill, jnp.float32).at[:v.shape[0]].set(v)

    def __call__(self, x_nchw):
        N, Cin, H, W = x_nchw.shape
        x = jnp.transpose(x_nchw, (0, 2, 3, 1))                      # NCHW->NHWC
        x = jnp.pad(x, ((0, 0), (0, 0), (0, 0), (0, self.cin_p - Cin)))
        count = float(N * H * W)

        # conv1 (+ fused partial stats of its raw output)
        y1, s1, q1 = conv3x3_bn_stats(x, self.w1p)
        scale1, shift1 = _bn_affine(s1, q1, self.gamma1p, self.beta1p, count)

        # BN1+ReLU fused into conv2 prologue; conv2 (+ fused partial stats)
        y2, s2, q2 = conv3x3_bn_stats(y1, self.w2p, scale1, shift1)
        scale2, shift2 = _bn_affine(s2, q2, self.gamma2p, self.beta2p, count)

        # Final BN2-apply + ReLU (elementwise, lane-dense, tiled grid)
        out = bn_relu_apply(y2, scale2, shift2)
        out = out[..., :self.cout]                                   # drop pad
        return jnp.transpose(out, (0, 3, 1, 2))                      # NHWC->NCHW


# ------------------------------ Reference ----------------------------------- #

def _reference(x_nchw, model):
    """Pure-JAX reference (lax conv + batch-stat BN + ReLU)."""
    def conv(x, w_hwio):
        return jax.lax.conv_general_dilated(
            x, w_hwio, window_strides=(1, 1), padding="SAME",
            dimension_numbers=("NHWC", "HWIO", "NHWC"))

    def bn_relu(y, g, b):
        mean = jnp.mean(y, axis=(0, 1, 2), keepdims=True)
        var = jnp.mean(jnp.square(y - mean), axis=(0, 1, 2), keepdims=True)
        return jnp.maximum((y - mean) * jax.lax.rsqrt(var + _EPS) * g + b, 0.0)

    x = jnp.transpose(x_nchw, (0, 2, 3, 1))
    y = bn_relu(conv(x, model.w1), model.gamma1, model.beta1)
    y = bn_relu(conv(y, model.w2), model.gamma2, model.beta2)
    return jnp.transpose(y, (0, 3, 1, 2))


if __name__ == "__main__":
    key = jax.random.PRNGKey(0)
    kx, kp = jax.random.split(key)

    # Small shapes consistent with the module: N=2, Cin=4, H=W=16, Cout=8.
    x = jax.random.normal(kx, (2, 4, 16, 16), jnp.float32)
    model = DoubleConvPallas(in_channels=4, out_channels=8, key=kp)

    out = jax.block_until_ready(model(x))
    ref = jax.block_until_ready(_reference(x, model))

    assert out.shape == (2, 8, 16, 16)
    assert jnp.allclose(out, ref, rtol=1e-3, atol=1e-3), \
        float(jnp.max(jnp.abs(out - ref)))

    print("KERNEL_OK")
</pallas_src>

<mosaic_0001>
module attributes {stable_mosaic.version = 11 : i64} {
  func.func @kernel(%arg0: i32, %arg1: memref<1x16x16x128xf32, #tpu.memory_space<vmem>>, %arg2: memref<1152x128xf32, #tpu.memory_space<vmem>>, %arg3: memref<1x16x16x128xf32, #tpu.memory_space<vmem>>, %arg4: memref<1x1x128xf32, #tpu.memory_space<vmem>>, %arg5: memref<1x1x128xf32, #tpu.memory_space<vmem>>, %arg6: memref<18x18x128xf32, #tpu.memory_space<vmem>>, %arg7: memref<256x128xf32, #tpu.memory_space<vmem>>) attributes {dimension_semantics = [#tpu.dimension_semantics<parallel>], iteration_bounds = array<i64: 2>, scalar_prefetch = 0 : i64, scratch_operands = 2 : i64, tpu.core_type = #tpu.core_type<tc>, window_params = [{transform_indices = @transform_0, window_bounds = array<i64: 1, 16, 16, 128>}, {pipeline_mode = #tpu.pipeline_mode<synchronous>, transform_indices = @transform_1, window_bounds = array<i64: 1152, 128>}, {transform_indices = @transform_2, window_bounds = array<i64: 1, 16, 16, 128>}, {transform_indices = @transform_3, window_bounds = array<i64: 1, 1, 128>}, {transform_indices = @transform_4, window_bounds = array<i64: 1, 1, 128>}]} {
    %c0 = arith.constant 0 : index
    %c0_0 = arith.constant 0 : index
    %c0_1 = arith.constant 0 : index
    %c0_2 = arith.constant 0 : index
    %0 = vector.load %arg1[%c0, %c0_0, %c0_1, %c0_2] : memref<1x16x16x128xf32, #tpu.memory_space<vmem>>, vector<1x16x16x128xf32>
    %1 = vector.shape_cast %0 : vector<1x16x16x128xf32> to vector<16x16x128xf32>
    %cst = arith.constant 0.000000e+00 : f32
    %2 = vector.broadcast %cst : f32 to vector<18x18x128xf32>
    %c0_3 = arith.constant 0 : index
    %c0_4 = arith.constant 0 : index
    %c0_5 = arith.constant 0 : index
    %3 = vector.load %arg6[%c0_3, %c0_4, %c0_5] : memref<18x18x128xf32, #tpu.memory_space<vmem>>, vector<18x18x128xf32>
    tpu.vector_store %arg6[%c0_3, %c0_4, %c0_5], %2 {strides = array<i32>} : memref<18x18x128xf32, #tpu.memory_space<vmem>>, vector<18x18x128xf32>,
    %c1 = arith.constant 1 : index
    %c1_6 = arith.constant 1 : index
    %c0_7 = arith.constant 0 : index
    %4 = vector.load %arg6[%c1, %c1_6, %c0_7] : memref<18x18x128xf32, #tpu.memory_space<vmem>>, vector<16x16x128xf32>
    tpu.vector_store %arg6[%c1, %c1_6, %c0_7], %1 {strides = array<i32>} : memref<18x18x128xf32, #tpu.memory_space<vmem>>, vector<16x16x128xf32>,
    %c0_8 = arith.constant 0 : index
    %c0_9 = arith.constant 0 : index
    %c0_10 = arith.constant 0 : index
    %5 = vector.load %arg6[%c0_8, %c0_9, %c0_10] : memref<18x18x128xf32, #tpu.memory_space<vmem>>, vector<16x16x128xf32>
    %6 = vector.shape_cast %5 : vector<16x16x128xf32> to vector<256x128xf32>
    %c0_11 = arith.constant 0 : index
    %c0_12 = arith.constant 0 : index
    %7 = vector.load %arg2[%c0_11, %c0_12] : memref<1152x128xf32, #tpu.memory_space<vmem>>, vector<128x128xf32>
    %cst_13 = arith.constant dense<0.000000e+00> : vector<256x128xf32>
    %8 = tpu.matmul %6, %7, %cst_13 {dimension_numbers = #tpu.dot_dimension_numbers<[1], [0], [0], [1], [0, 0, 1, 1], [], []>} : vector<256x128xf32>, vector<128x128xf32>, vector<256x128xf32> -> vector<256x128xf32>
    %c0_14 = arith.constant 0 : index
    %c0_15 = arith.constant 0 : index
    %9 = vector.load %arg7[%c0_14, %c0_15] : memref<256x128xf32, #tpu.memory_space<vmem>>, vector<256x128xf32>
    tpu.vector_store %arg7[%c0_14, %c0_15], %8 {strides = array<i32>} : memref<256x128xf32, #tpu.memory_space<vmem>>, vector<256x128xf32>,
    %c0_16 = arith.constant 0 : index
    %c1_17 = arith.constant 1 : index
    %c0_18 = arith.constant 0 : index
    %10 = vector.load %arg6[%c0_16, %c1_17, %c0_18] : memref<18x18x128xf32, #tpu.memory_space<vmem>>, vector<16x16x128xf32>
    %11 = vector.shape_cast %10 : vector<16x16x128xf32> to vector<256x128xf32>
    %c128 = arith.constant 128 : index
    %c0_19 = arith.constant 0 : index
    %12 = vector.load %arg2[%c128, %c0_19] : memref<1152x128xf32, #tpu.memory_space<vmem>>, vector<128x128xf32>
    %cst_20 = arith.constant dense<0.000000e+00> : vector<256x128xf32>
    %13 = tpu.matmul %11, %12, %cst_20 {dimension_numbers = #tpu.dot_dimension_numbers<[1], [0], [0], [1], [0, 0, 1, 1], [], []>} : vector<256x128xf32>, vector<128x128xf32>, vector<256x128xf32> -> vector<256x128xf32>
    %c0_21 = arith.constant 0 : index
    %c0_22 = arith.constant 0 : index
    %14 = vector.load %arg7[%c0_21, %c0_22] : memref<256x128xf32, #tpu.memory_space<vmem>>, vector<256x128xf32>
    %15 = arith.addf %14, %13 : vector<256x128xf32>
    %c0_23 = arith.constant 0 : index
    %c0_24 = arith.constant 0 : index
    %16 = vector.load %arg7[%c0_23, %c0_24] : memref<256x128xf32, #tpu.memory_space<vmem>>, vector<256x128xf32>
    tpu.vector_store %arg7[%c0_23, %c0_24], %15 {strides = array<i32>} : memref<256x128xf32, #tpu.memory_space<vmem>>, vector<256x128xf32>,
    %c0_25 = arith.constant 0 : index
    %c2 = arith.constant 2 : index
    %c0_26 = arith.constant 0 : index
    %17 = vector.load %arg6[%c0_25, %c2, %c0_26] : memref<18x18x128xf32, #tpu.memory_space<vmem>>, vector<16x16x128xf32>
    %18 = vector.shape_cast %17 : vector<16x16x128xf32> to vector<256x128xf32>
    %c256 = arith.constant 256 : index
    %c0_27 = arith.constant 0 : index
    %19 = vector.load %arg2[%c256, %c0_27] : memref<1152x128xf32, #tpu.memory_space<vmem>>, vector<128x128xf32>
    %cst_28 = arith.constant dense<0.000000e+00> : vector<256x128xf32>
    %20 = tpu.matmul %18, %19, %cst_28 {dimension_numbers = #tpu.dot_dimension_numbers<[1], [0], [0], [1], [0, 0, 1, 1], [], []>} : vector<256x128xf32>, vector<128x128xf32>, vector<256x128xf32> -> vector<256x128xf32>
    %c0_29 = arith.constant 0 : index
    %c0_30 = arith.constant 0 : index
    %21 = vector.load %arg7[%c0_29, %c0_30] : memref<256x128xf32, #tpu.memory_space<vmem>>, vector<256x128xf32>
    %22 = arith.addf %21, %20 : vector<256x128xf32>
    %c0_31 = arith.constant 0 : index
    %c0_32 = arith.constant 0 : index
    %23 = vector.load %arg7[%c0_31, %c0_32] : memref<256x128xf32, #tpu.memory_space<vmem>>, vector<256x128xf32>
    tpu.vector_store %arg7[%c0_31, %c0_32], %22 {strides = array<i32>} : memref<256x128xf32, #tpu.memory_space<vmem>>, vector<256x128xf32>,
    %c1_33 = arith.constant 1 : index
    %c0_34 = arith.constant 0 : index
    %c0_35 = arith.constant 0 : index
    %24 = vector.load %arg6[%c1_33, %c0_34, %c0_35] : memref<18x18x128xf32, #tpu.memory_space<vmem>>, vector<16x16x128xf32>
    %25 = vector.shape_cast %24 : vector<16x16x128xf32> to vector<256x128xf32>
    %c384 = arith.constant 384 : index
    %c0_36 = arith.constant 0 : index
    %26 = vector.load %arg2[%c384, %c0_36] : memref<1152x128xf32, #tpu.memory_space<vmem>>, vector<128x128xf32>
    %cst_37 = arith.constant dense<0.000000e+00> : vector<256x128xf32>
    %27 = tpu.matmul %25, %26, %cst_37 {dimension_numbers = #tpu.dot_dimension_numbers<[1], [0], [0], [1], [0, 0, 1, 1], [], []>} : vector<256x128xf32>, vector<128x128xf32>, vector<256x128xf32> -> vector<256x128xf32>
    %c0_38 = arith.constant 0 : index
    %c0_39 = arith.constant 0 : index
    %28 = vector.load %arg7[%c0_38, %c0_39] : memref<256x128xf32, #tpu.memory_space<vmem>>, vector<256x128xf32>
    %29 = arith.addf %28, %27 : vector<256x128xf32>
    %c0_40 = arith.constant 0 : index
    %c0_41 = arith.constant 0 : index
    %30 = vector.load %arg7[%c0_40, %c0_41] : memref<256x128xf32, #tpu.memory_space<vmem>>, vector<256x128xf32>
    tpu.vector_store %arg7[%c0_40, %c0_41], %29 {strides = array<i32>} : memref<256x128xf32, #tpu.memory_space<vmem>>, vector<256x128xf32>,
    %c1_42 = arith.constant 1 : index
    %c1_43 = arith.constant 1 : index
    %c0_44 = arith.constant 0 : index
    %31 = vector.load %arg6[%c1_42, %c1_43, %c0_44] : memref<18x18x128xf32, #tpu.memory_space<vmem>>, vector<16x16x128xf32>
    %32 = vector.shape_cast %31 : vector<16x16x128xf32> to vector<256x128xf32>
    %c512 = arith.constant 512 : index
    %c0_45 = arith.constant 0 : index
    %33 = vector.load %arg2[%c512, %c0_45] : memref<1152x128xf32, #tpu.memory_space<vmem>>, vector<128x128xf32>
    %cst_46 = arith.constant dense<0.000000e+00> : vector<256x128xf32>
    %34 = tpu.matmul %32, %33, %cst_46 {dimension_numbers = #tpu.dot_dimension_numbers<[1], [0], [0], [1], [0, 0, 1, 1], [], []>} : vector<256x128xf32>, vector<128x128xf32>, vector<256x128xf32> -> vector<256x128xf32>
    %c0_47 = arith.constant 0 : index
    %c0_48 = arith.constant 0 : index
    %35 = vector.load %arg7[%c0_47, %c0_48] : memref<256x128xf32, #tpu.memory_space<vmem>>, vector<256x128xf32>
    %36 = arith.addf %35, %34 : vector<256x128xf32>
    %c0_49 = arith.constant 0 : index
    %c0_50 = arith.constant 0 : index
    %37 = vector.load %arg7[%c0_49, %c0_50] : memref<256x128xf32, #tpu.memory_space<vmem>>, vector<256x128xf32>
    tpu.vector_store %arg7[%c0_49, %c0_50], %36 {strides = array<i32>} : memref<256x128xf32, #tpu.memory_space<vmem>>, vector<256x128xf32>,
    %c1_51 = arith.constant 1 : index
    %c2_52 = arith.constant 2 : index
    %c0_53 = arith.constant 0 : index
    %38 = vector.load %arg6[%c1_51, %c2_52, %c0_53] : memref<18x18x128xf32, #tpu.memory_space<vmem>>, vector<16x16x128xf32>
    %39 = vector.shape_cast %38 : vector<16x16x128xf32> to vector<256x128xf32>
    %c640 = arith.constant 640 : index
    %c0_54 = arith.constant 0 : index
    %40 = vector.load %arg2[%c640, %c0_54] : memref<1152x128xf32, #tpu.memory_space<vmem>>, vector<128x128xf32>
    %cst_55 = arith.constant dense<0.000000e+00> : vector<256x128xf32>
    %41 = tpu.matmul %39, %40, %cst_55 {dimension_numbers = #tpu.dot_dimension_numbers<[1], [0], [0], [1], [0, 0, 1, 1], [], []>} : vector<256x128xf32>, vector<128x128xf32>, vector<256x128xf32> -> vector<256x128xf32>
    %c0_56 = arith.constant 0 : index
    %c0_57 = arith.constant 0 : index
    %42 = vector.load %arg7[%c0_56, %c0_57] : memref<256x128xf32, #tpu.memory_space<vmem>>, vector<256x128xf32>
    %43 = arith.addf %42, %41 : vector<256x128xf32>
    %c0_58 = arith.constant 0 : index
    %c0_59 = arith.constant 0 : index
    %44 = vector.load %arg7[%c0_58, %c0_59] : memref<256x128xf32, #tpu.memory_space<vmem>>, vector<256x128xf32>
    tpu.vector_store %arg7[%c0_58, %c0_59], %43 {strides = array<i32>} : memref<256x128xf32, #tpu.memory_space<vmem>>, vector<256x128xf32>,
    %c2_60 = arith.constant 2 : index
    %c0_61 = arith.constant 0 : index
    %c0_62 = arith.constant 0 : index
    %45 = vector.load %arg6[%c2_60, %c0_61, %c0_62] : memref<18x18x128xf32, #tpu.memory_space<vmem>>, vector<16x16x128xf32>
    %46 = vector.shape_cast %45 : vector<16x16x128xf32> to vector<256x128xf32>
    %c768 = arith.constant 768 : index
    %c0_63 = arith.constant 0 : index
    %47 = vector.load %arg2[%c768, %c0_63] : memref<1152x128xf32, #tpu.memory_space<vmem>>, vector<128x128xf32>
    %cst_64 = arith.constant dense<0.000000e+00> : vector<256x128xf32>
    %48 = tpu.matmul %46, %47, %cst_64 {dimension_numbers = #tpu.dot_dimension_numbers<[1], [0], [0], [1], [0, 0, 1, 1], [], []>} : vector<256x128xf32>, vector<128x128xf32>, vector<256x128xf32> -> vector<256x128xf32>
    %c0_65 = arith.constant 0 : index
    %c0_66 = arith.constant 0 : index
    %49 = vector.load %arg7[%c0_65, %c0_66] : memref<256x128xf32, #tpu.memory_space<vmem>>, vector<256x128xf32>
    %50 = arith.addf %49, %48 : vector<256x128xf32>
    %c0_67 = arith.constant 0 : index
    %c0_68 = arith.constant 0 : index
    %51 = vector.load %arg7[%c0_67, %c0_68] : memref<256x128xf32, #tpu.memory_space<vmem>>, vector<256x128xf32>
    tpu.vector_store %arg7[%c0_67, %c0_68], %50 {strides = array<i32>} : memref<256x128xf32, #tpu.memory_space<vmem>>, vector<256x128xf32>,
    %c2_69 = arith.constant 2 : index
    %c1_70 = arith.constant 1 : index
    %c0_71 = arith.constant 0 : index
    %52 = vector.load %arg6[%c2_69, %c1_70, %c0_71] : memref<18x18x128xf32, #tpu.memory_space<vmem>>, vector<16x16x128xf32>
    %53 = vector.shape_cast %52 : vector<16x16x128xf32> to vector<256x128xf32>
    %c896 = arith.constant 896 : index
    %c0_72 = arith.constant 0 : index
    %54 = vector.load %arg2[%c896, %c0_72] : memref<1152x128xf32, #tpu.memory_space<vmem>>, vector<128x128xf32>
    %cst_73 = arith.constant dense<0.000000e+00> : vector<256x128xf32>
    %55 = tpu.matmul %53, %54, %cst_73 {dimension_numbers = #tpu.dot_dimension_numbers<[1], [0], [0], [1], [0, 0, 1, 1], [], []>} : vector<256x128xf32>, vector<128x128xf32>, vector<256x128xf32> -> vector<256x128xf32>
    %c0_74 = arith.constant 0 : index
    %c0_75 = arith.constant 0 : index
    %56 = vector.load %arg7[%c0_74, %c0_75] : memref<256x128xf32, #tpu.memory_space<vmem>>, vector<256x128xf32>
    %57 = arith.addf %56, %55 : vector<256x128xf32>
    %c0_76 = arith.constant 0 : index
    %c0_77 = arith.constant 0 : index
    %58 = vector.load %arg7[%c0_76, %c0_77] : memref<256x128xf32, #tpu.memory_space<vmem>>, vector<256x128xf32>
    tpu.vector_store %arg7[%c0_76, %c0_77], %57 {strides = array<i32>} : memref<256x128xf32, #tpu.memory_space<vmem>>, vector<256x128xf32>,
    %c2_78 = arith.constant 2 : index
    %c2_79 = arith.constant 2 : index
    %c0_80 = arith.constant 0 : index
    %59 = vector.load %arg6[%c2_78, %c2_79, %c0_80] : memref<18x18x128xf32, #tpu.memory_space<vmem>>, vector<16x16x128xf32>
    %60 = vector.shape_cast %59 : vector<16x16x128xf32> to vector<256x128xf32>
    %c1024 = arith.constant 1024 : index
    %c0_81 = arith.constant 0 : index
    %61 = vector.load %arg2[%c1024, %c0_81] : memref<1152x128xf32, #tpu.memory_space<vmem>>, vector<128x128xf32>
    %cst_82 = arith.constant dense<0.000000e+00> : vector<256x128xf32>
    %62 = tpu.matmul %60, %61, %cst_82 {dimension_numbers = #tpu.dot_dimension_numbers<[1], [0], [0], [1], [0, 0, 1, 1], [], []>} : vector<256x128xf32>, vector<128x128xf32>, vector<256x128xf32> -> vector<256x128xf32>
    %c0_83 = arith.constant 0 : index
    %c0_84 = arith.constant 0 : index
    %63 = vector.load %arg7[%c0_83, %c0_84] : memref<256x128xf32, #tpu.memory_space<vmem>>, vector<256x128xf32>
    %64 = arith.addf %63, %62 : vector<256x128xf32>
    %c0_85 = arith.constant 0 : index
    %c0_86 = arith.constant 0 : index
    %65 = vector.load %arg7[%c0_85, %c0_86] : memref<256x128xf32, #tpu.memory_space<vmem>>, vector<256x128xf32>
    tpu.vector_store %arg7[%c0_85, %c0_86], %64 {strides = array<i32>} : memref<256x128xf32, #tpu.memory_space<vmem>>, vector<256x128xf32>,
    %c0_87 = arith.constant 0 : index
    %c0_88 = arith.constant 0 : index
    %66 = vector.load %arg7[%c0_87, %c0_88] : memref<256x128xf32, #tpu.memory_space<vmem>>, vector<256x128xf32>
    %67 = vector.shape_cast %66 : vector<256x128xf32> to vector<1x16x16x128xf32>
    %c0_89 = arith.constant 0 : index
    %c0_90 = arith.constant 0 : index
    %c0_91 = arith.constant 0 : index
    %c0_92 = arith.constant 0 : index
    %68 = vector.load %arg3[%c0_89, %c0_90, %c0_91, %c0_92] : memref<1x16x16x128xf32, #tpu.memory_space<vmem>>, vector<1x16x16x128xf32>
    tpu.vector_store %arg3[%c0_89, %c0_90, %c0_91, %c0_92], %67 {strides = array<i32>} : memref<1x16x16x128xf32, #tpu.memory_space<vmem>>, vector<1x16x16x128xf32>,
    %cst_93 = arith.constant dense<0.000000e+00> : vector<128xf32>
    %69 = vector.multi_reduction <add>, %66, %cst_93 [0] : vector<256x128xf32> to vector<128xf32>
    %70 = vector.shape_cast %69 : vector<128xf32> to vector<1x1x128xf32>
    %c0_94 = arith.constant 0 : index
    %c0_95 = arith.constant 0 : index
    %c0_96 = arith.constant 0 : index
    %71 = vector.load %arg4[%c0_94, %c0_95, %c0_96] : memref<1x1x128xf32, #tpu.memory_space<vmem>>, vector<1x1x128xf32>
    tpu.vector_store %arg4[%c0_94, %c0_95, %c0_96], %70 {strides = array<i32>} : memref<1x1x128xf32, #tpu.memory_space<vmem>>, vector<1x1x128xf32>,
    %72 = arith.mulf %66, %66 : vector<256x128xf32>
    %cst_97 = arith.constant dense<0.000000e+00> : vector<128xf32>
    %73 = vector.multi_reduction <add>, %72, %cst_97 [0] : vector<256x128xf32> to vector<128xf32>
    %74 = vector.shape_cast %73 : vector<128xf32> to vector<1x1x128xf32>
    %c0_98 = arith.constant 0 : index
    %c0_99 = arith.constant 0 : index
    %c0_100 = arith.constant 0 : index
    %75 = vector.load %arg5[%c0_98, %c0_99, %c0_100] : memref<1x1x128xf32, #tpu.memory_space<vmem>>, vector<1x1x128xf32>
    tpu.vector_store %arg5[%c0_98, %c0_99, %c0_100], %74 {strides = array<i32>} : memref<1x1x128xf32, #tpu.memory_space<vmem>>, vector<1x1x128xf32>,
    return
  }
  func.func @transform_0(%arg0: i32) -> (i32, i32, i32, i32) {
    %c0_i32 = arith.constant 0 : i32
    %c0_i32_0 = arith.constant 0 : i32
    %c0_i32_1 = arith.constant 0 : i32
    %c0_i32_2 = arith.constant 0 : i32
    return %arg0, %c0_i32, %c0_i32_0, %c0_i32_1 : i32, i32, i32, i32
  }
  func.func @transform_1(%arg0: i32) -> (i32, i32) {
    %c0_i32 = arith.constant 0 : i32
    %c0_i32_0 = arith.constant 0 : i32
    %c0_i32_1 = arith.constant 0 : i32
    return %c0_i32, %c0_i32_0 : i32, i32
  }
  func.func @transform_2(%arg0: i32) -> (i32, i32, i32, i32) {
    %c0_i32 = arith.constant 0 : i32
    %c0_i32_0 = arith.constant 0 : i32
    %c0_i32_1 = arith.constant 0 : i32
    %c0_i32_2 = arith.constant 0 : i32
    return %arg0, %c0_i32, %c0_i32_0, %c0_i32_1 : i32, i32, i32, i32
  }
  func.func @transform_3(%arg0: i32) -> (i32, i32, i32) {
    %c0_i32 = arith.constant 0 : i32
    %c0_i32_0 = arith.constant 0 : i32
    %c0_i32_1 = arith.constant 0 : i32
    return %arg0, %c0_i32, %c0_i32_0 : i32, i32, i32
  }
  func.func @transform_4(%arg0: i32) -> (i32, i32, i32) {
    %c0_i32 = arith.constant 0 : i32
    %c0_i32_0 = arith.constant 0 : i32
    %c0_i32_1 = arith.constant 0 : i32
    return %arg0, %c0_i32, %c0_i32_0 : i32, i32, i32
  }
}

</mosaic_0001>

<bundles_post_ra>
// kernel: tpu_custom_call.1
= control target key start
LH: loop header
LB: loop body
LE: loop exit
PB: predicated region body
PF: predicated region fallthrough
CT: control target
= control target key end

     0   :  { %10 = vsyncpa [#allocation5], 0  ;;  %s6913_s0 = inlined_call_operand.hbm [shape: f32[2,16,16,128], index: 0, kind: input, shape index: {}]   ;;  %s6914_s1 = inlined_call_operand.hbm [shape: f32[1152,128], index: 1, kind: input, shape index: {}]   ;;  %s6915_s2 = inlined_call_operand.hbm [shape: f32[2,16,16,128], index: 2, kind: output, shape index: {0}]   ;;  %s6916_s3 = inlined_call_operand.hbm [shape: f32[2,1,128], index: 3, kind: output, shape index: {1}]   ;;  %s6917_s4 = inlined_call_operand.hbm [shape: f32[2,1,128], index: 4, kind: output, shape index: {2}]  }
   0x1   :  { %12 = vsyncpa [#allocation5 + $0x1], 0 }
   0x2   :  { %13 = vsyncpa [#allocation8], 0 }
   0x3   :  { %14 = vsyncpa [#allocation6], 0 }
   0x4   :  { %16 = vsyncpa [#allocation6 + $0x1], 0 }
   0x5   :  { %17 = vsyncpa [#allocation11], 0 }
   0x6   :  { %19 = vsyncpa [#allocation11 + $0x1], 0  ;;  %s6018_s15 = smov 0   ;;  %s6020_s16 = smov 0  }
   0x7   :  { %s6022_s17 = smov 0   ;;  %s6024_s18 = smov 0  }
   0x8 LB: > { %s6039_s19 = sadd.s32 4294967295, %s5981_s18   ;;  %s3980_s20 = sadd.s32 4294967294, %s5981_s18   ;;  %s5981_s18 = sphi %s6024_s18, %s7050_s18   ;;  %s5977_s17 = sphi %s6022_s17, %s7049_s17   ;;  %s5973_s16 = sphi %s6020_s16, %s7048_s16   ;;  %s5969_s15 = sphi %s6018_s15, %s7047_s15  }
   0x9   : > { %p45_p0 = scmp.ne.s32.totalorder %s5973_s16, %s5969_s15  ;;  %p6918_p1 = scmp.eq.s32.totalorder %s6039_s19, 0 }
   0xa   : > { %p96_p3 = scmp.eq.s32.totalorder %s3980_s20, 1  ;;  %p3981_p5 = scmp.ge.s32.totalorder %s5981_s18, 1 }
   0xb   : > { %p6050_p4 = por %p6918_p1, %p45_p0  ;;  %p155_p7 = scmp.lt.s32.totalorder %s5981_s18, 3 }
   0xc   : > { %p6055_p6 = por %p96_p3, %p45_p0  ;;  %s5983_s24 = smov [#allocation7]  }
   0xd   : > { %s6964_s21 = scalar_select %p6050_p4, 1, 0 }
   0xe   : > { %s6965_s22 = scalar_select %p6055_p6, 1, 0 }
   0xf   : > { %p6060_p8 = pnand %p3981_p5, %p155_p7  ;;  %s167_s25 = sshll.u32 %s5983_s24, 4  ;;  %s6064_s25 = int_to_ptr.vmem [resolvable:$true] %s167_s25 }
  0x10   : > { %s6076_s27 = sadd.s32 1, %s5981_s18   ;;  %s32_s28 = sadd.s32 1, %s5977_s17 }
  0x11   : > { %s6966_s23 = scalar_select %p6060_p8, 1, 0 }
  0x12   : > { %p5724_p9 = pneg %p6060_p8  ;;  %s29_s29 = ssub.s32 %s5981_s18, %s6076_s27 }
  0x13   : > { %s5793_s6 = scalar_lea.hbm %s6914_s1, 18432 }
  0x14   : > { %p6071_p11 = pnand %p5724_p9, %p6918_p1  ;;  %p5794_p12 = scmp.ne.s32.totalorder %s6914_s1, %s5793_s6 }
  0x15   : > { %p5800_p5 = scmp.lt.u32.totalorder %s5793_s6, %s6914_s1 }
  0x16   : > { %p5795_p13 = pneg %p6071_p11 }
  0x18   : > { %p5796_p0 = pnand %p5795_p13, %p5794_p12 }
  0x1a   : > { %p5797_p3 = pneg %p5796_p0 }
  0x1c   : > { %p5802_p7 = pnand %p5800_p5, %p5797_p3 }
  0x1e   : > { %5805 = shalt.err (!%p5802_p7)
}
  0x1f   : > { %s5806_s11 = scalar_lea.vmem %s6064_s25, 18432  ;;  %p5814_p2 = scmp.lt.s32.totalorder %s6064_s25, %s6064_s25 }
  0x20   : > { %p5807_p9 = scmp.ne.s32.totalorder %s6064_s25, %s5806_s11  ;;  %p5815_p6 = scmp.lt.s32.totalorder %s5806_s11, %s5806_s11 }
  0x22   : > { %p5809_p10 = pnand %p5807_p9, %p5795_p13  ;;  %p5816_p4 = por %p5815_p6, %p5814_p2 }
  0x24   : > { %p5810_p1 = pneg %p5809_p10 }
  0x26   : > { %p5817_p8 = pnand %p5816_p4, %p5810_p1 }
  0x28   : > { %5820 = shalt.err (!%p5817_p8)
}
  0x29   : > { %s5984_s12 = smov 128   ;;  %s5985_s13 = smov 8  }
  0x2a   : > { %5727 = dma.hbm_to_vmem [thread:$0]  (!%p6071_p11), %s6914_s1, 18432, %s6064_s25, [#allocation8], %s5984_s12, %s5984_s12, %s5985_s13  }
  0x2b   : > { %p30_p1 = scmp.eq.s32.totalorder %s29_s29, 0  ;;  %p39_p2 = scmp.ne.s32.totalorder %s5977_s17, %s5973_s16 }
  0x2c   : > { %p40_p4 = scmp.eq.s32.totalorder %s5981_s18, 0  ;;  %p5743_p6 = scmp.lt.s32.totalorder %s5981_s18, 2 }
  0x2d   : > { %s6110_s30 = scalar_select %p30_p1, %s5977_s17, %s32_s28  }
  0x2e   : > { %p41_p8 = por %p40_p4, %p39_p2  ;;  %p6968_p10 = scmp.eq.s32.totalorder %s6039_s19, 1 }
  0x2f   : > { %s181_s26 = sand.u32 1, %s5977_s17   ;;  %s3998_s6 = sshll.u32 %s5981_s18, 12 }
  0x30   : > { %p6114_p12 = por %p6968_p10, %p39_p2  ;;  %s3984_s7 = sshll.u32 %s181_s26, 8 }
  0x31   : > { %s6123_s10 = scalar_lea.hbm %s6913_s0, %s3998_s6  ;;  %s185_s25 = scalar_lea.vmem [#allocation4], %s3984_s7 }
  0x32   : > { %s192_s28 = sshll.u32 %s185_s25, 4  ;;  %p6125_p11 = pnand %p5743_p6, %p41_p8  ;;  %s6129_s28 = int_to_ptr.vmem [resolvable:$true] %s192_s28 }
  0x33   : > { %s6131_s11 = scalar_lea.sflag [#allocation5], %s181_s26  ;;  %s5821_s14 = scalar_lea.hbm %s6123_s10, 4096 }
  0x34   : > { %p5822_p13 = scmp.ne.s32.totalorder %s6123_s10, %s5821_s14  ;;  %p5823_p0 = pneg %p6125_p11 }
  0x35   : > { %s5826_s7 = scalar_lea.hbm %s6913_s0, 8192  ;;  %p5827_p7 = scmp.lt.u32.totalorder %s6123_s10, %s6913_s0 }
  0x36   : > { %p5824_p3 = pnand %p5823_p0, %p5822_p13  ;;  %p5828_p9 = scmp.lt.u32.totalorder %s5826_s7, %s5821_s14 }
  0x37   : > { %p5830_p2 = scmp.lt.u32.totalorder %s5821_s14, %s6123_s10 }
  0x38   : > { %p5825_p5 = pneg %p5824_p3  ;;  %p5829_p1 = por %p5828_p9, %p5827_p7 }
  0x3a   : > { %p5831_p4 = por %p5830_p2, %p5829_p1 }
  0x3c   : > { %p5832_p6 = pnand %p5831_p4, %p5825_p5 }
  0x3e   : > { %5835 = shalt.err (!%p5832_p6)
}
  0x3f   : > { %s5836_s26 = scalar_lea.vmem %s6129_s28, 4096  ;;  %s5986_s25 = smov [#allocation4]  }
  0x40   : > { %p5837_p8 = scmp.ne.s32.totalorder %s6129_s28, %s5836_s26  ;;  %s5841_s24 = sshll.u32 %s5986_s25, 4  ;;  %s5842_s24 = int_to_ptr.vmem [resolvable:$false] %s5841_s24 }
  0x41   : > { %s5843_s6 = scalar_lea.vmem %s5842_s24, 8192  ;;  %p5844_p3 = scmp.lt.s32.totalorder %s6129_s28, %s5842_s24 }
  0x42   : > { %p5839_p10 = pnand %p5837_p8, %p5823_p0  ;;  %p5845_p7 = scmp.lt.s32.totalorder %s5843_s6, %s5836_s26 }
  0x44   : > { %p5840_p13 = pneg %p5839_p10  ;;  %p5846_p9 = por %p5845_p7, %p5844_p3 }
  0x46   : > { %p5847_p1 = pnand %p5846_p9, %p5840_p13 }
  0x48   : > { %5850 = shalt.err (!%p5847_p1)
}
  0x49   : > { %5731 = dma.hbm_to_vmem [thread:$0]  (!%p6125_p11), %s6123_s10, 4096, %s6129_s28, %s6131_s11, %s5984_s12, %s5984_s12, %s5985_s13  }
  0x4a   : > { %p6971_p0 = scmp.ne.s32.totalorder %s6966_s23, 0 }
  0x4c   : > { %204 = sbr.rel (%p6971_p0) target bundleno = 689 (0x2b1), region = 28 }
  0x53   : > { %s6165_s14 = sand.u32 1, %s5973_s16   ;;  %p6972_p5 = scmp.ne.s32.totalorder %s6964_s21, 0 }
  0x54   : > { %s3988_s7 = sshll.u32 %s6165_s14, 8  ;;  %s207_s8 = scalar_lea.sflag [#allocation5], %s6165_s14 }
  0x55   : > { %s6171_s29 = scalar_lea.vmem [#allocation4], %s3988_s7 }
  0x56   : > { %5952 = dma.done.wait (%p6972_p5), %s207_s8, 4096  }
  0x57   : > { %5954 = vsyncadd (%p6972_p5), %s207_s8, 4294963200  ;;  %p6973_p11 = scmp.eq.s32.totalorder %s6039_s19, 0 }
  0x59   : > { %5956 = dma.done.wait (%p6973_p11), [#allocation8], 18432   ;;  %p6974_p2 = pmov %p6973_p11 }
  0x5a   : > { %v5987_v0 = vmov 0.0   ;;  %v398_v1 = vld [vmem:[#allocation7] sm:$0xff]  ;;  %v399_v2 = vld [vmem:[#allocation7 + $0x8] sm:$0xff]  ;;  %v400_v6 = vld [vmem:[#allocation7 + $0x10] sm:$0xff]  ;;  %s6753_s21 = scalar_lea.vmem [#allocation9], %s3988_s7  ;;  %s3999_s23 = sshll.u32 %s6039_s19, 12 }
  0x5b   : > { %5958 = vsyncadd (%p6974_p2), [#allocation8], 4294948864  ;;  %279 = vst [vmem:[#allocation2] sm:$0xff] %v5987_v0  ;;  %4464 = vmatprep.mubr.f32.mxu1 %v5987_v0  ;;  %v1810_v3 = vld [vmem:[#allocation7 + $0x200] sm:$0xff]  ;;  %v5152_v4 = vpack.c.bf16 %v399_v2, %v398_v1  ;;  %v1811_v5 = vld [vmem:[#allocation7 + $0x208] sm:$0xff]  ;;  %s3818_s12 = sshll.u32 %s6753_s21, 4  ;;  %s6795_s28 = scalar_lea.hbm %s6915_s2, %s3999_s23  ;;  %s6797_s12 = int_to_ptr.vmem [resolvable:$true] %s3818_s12 }
  0x5c   : > { %280 = vst [vmem:[#allocation2 + $0x8] sm:$0xff] %v5987_v0  ;;  %281 = vst [vmem:[#allocation2 + $0x10] sm:$0x3] %v5987_v0  ;;  %v401_v7 = vld [vmem:[#allocation7 + $0x18] sm:$0xff]  ;;  %v6236_v8 = vpack.c.bf16 %v1811_v5, %v1810_v3  ;;  %v1812_v10 = vld [vmem:[#allocation7 + $0x210] sm:$0xff]  ;;  %s3797_s11 = scalar_lea.sflag [#allocation6], %s6165_s14 }
  0x5d   : > { %282 = vst [vmem:[#allocation2 + $0x18] sm:$0xff] %v5987_v0  ;;  %283 = vst [vmem:[#allocation2 + $0x20] sm:$0xff] %v5987_v0  ;;  %v5156_v9 = vpack.c.bf16 %v401_v7, %v400_v6  ;;  %v1813_v11 = vld [vmem:[#allocation7 + $0x218] sm:$0xff]  ;;  %v402_v12 = vld [vmem:[#allocation7 + $0x20] sm:$0xff]  ;;  %5153 = vmatprep.subr.bf16.mxu1 %v5152_v4  ;;  %s5851_s9 = scalar_lea.vmem %s6797_s12, 4096  ;;  %s5988_s26 = smov [#allocation9]  }
  0x5e   : > { %284 = vst [vmem:[#allocation2 + $0x28] sm:$0x3] %v5987_v0  ;;  %285 = vst [vmem:[#allocation2 + $0x30] sm:$0xff] %v5987_v0  ;;  %v6238_v13 = vpack.c.bf16 %v1813_v11, %v1812_v10  ;;  %v403_v14 = vld [vmem:[#allocation7 + $0x28] sm:$0xff]  ;;  %v1814_v15 = vld [vmem:[#allocation7 + $0x220] sm:$0xff]  ;;  %5281 = vmatprep.subr.bf16.mxu0 %v6236_v8  ;;  %5155 = vmatpush3.bf16.msra.mxu1 %v5152_v4  ;;  %p5852_p4 = scmp.ne.s32.totalorder %s6797_s12, %s5851_s9  ;;  %s5855_s25 = sshll.u32 %s5988_s26, 4  ;;  %s5856_s25 = int_to_ptr.vmem [resolvable:$false] %s5855_s25 }
  0x5f   : > { %286 = vst [vmem:[#allocation2 + $0x38] sm:$0xff] %v5987_v0  ;;  %287 = vst [vmem:[#allocation2 + $0x40] sm:$0x3] %v5987_v0  ;;  %v1815_v16 = vld [vmem:[#allocation7 + $0x228] sm:$0xff]  ;;  %5283 = vmatpush3.bf16.msra.mxu0 %v6236_v8  ;;  %5157 = vmatprep.subr.bf16.mxu1 %v5156_v9  ;;  %v5160_v17 = vpack.c.bf16 %v403_v14, %v402_v12  ;;  %v404_v19 = vld [vmem:[#allocation7 + $0x30] sm:$0xff]  ;;  %s5857_s24 = scalar_lea.vmem %s5856_s25, 8192  ;;  %p5858_p10 = scmp.lt.s32.totalorder %s6797_s12, %s5856_s25 }
  0x60   : > { %288 = vst [vmem:[#allocation2 + $0x48] sm:$0xff] %v5987_v0  ;;  %289 = vst [vmem:[#allocation2 + $0x50] sm:$0xff] %v5987_v0  ;;  %5285 = vmatprep.subr.bf16.mxu0 %v6238_v13  ;;  %v6243_v18 = vpack.c.bf16 %v1815_v16, %v1814_v15  ;;  %v405_v20 = vld [vmem:[#allocation7 + $0x38] sm:$0xff]  ;;  %v1816_v21 = vld [vmem:[#allocation7 + $0x230] sm:$0xff]  ;;  %p5853_p6 = pnand %p5852_p4, %p6114_p12  ;;  %p5859_p13 = scmp.lt.s32.totalorder %s5857_s24, %s5851_s9 }
  0x61   : > { %290 = vst [vmem:[#allocation2 + $0x58] sm:$0x3] %v5987_v0  ;;  %291 = vst [vmem:[#allocation2 + $0x60] sm:$0xff] %v5987_v0  ;;  %v1817_v22 = vld [vmem:[#allocation7 + $0x238] sm:$0xff]  ;;  %v5164_v23 = vpack.c.bf16 %v405_v20, %v404_v19  ;;  %v406_v25 = vld [vmem:[#allocation7 + $0x40] sm:$0xff] }
  0x62   : > { %292 = vst [vmem:[#allocation2 + $0x68] sm:$0xff] %v5987_v0  ;;  %293 = vst [vmem:[#allocation2 + $0x70] sm:$0x3] %v5987_v0  ;;  %5159 = vmatpush3.bf16.msra.mxu1 %v5156_v9  ;;  %v6247_v24 = vpack.c.bf16 %v1817_v22, %v1816_v21  ;;  %v407_v26 = vld [vmem:[#allocation7 + $0x48] sm:$0xff]  ;;  %v6250_v27 = vld [vmem:[%s6171_s29] sm:$0xff]  ;;  %p5854_p8 = pneg %p5853_p6  ;;  %p5860_p3 = por %p5859_p13, %p5858_p10 }
  0x63   : > { %294 = vst [vmem:[#allocation2 + $0x78] sm:$0xff] %v5987_v0  ;;  %295 = vst [vmem:[#allocation2 + $0x80] sm:$0xff] %v5987_v0  ;;  %5287 = vmatpush3.bf16.msra.mxu0 %v6238_v13  ;;  %5161 = vmatprep.subr.bf16.mxu1 %v5160_v17  ;;  %v1818_v28 = vld [vmem:[#allocation7 + $0x240] sm:$0xff]  ;;  %v1819_v29 = vld [vmem:[#allocation7 + $0x248] sm:$0xff]  ;;  %v5168_v32 = vpack.c.bf16 %v407_v26, %v406_v25 }
  0x64   : > { %296 = vst [vmem:[#allocation2 + $0x88] sm:$0x3] %v5987_v0  ;;  %297 = vst [vmem:[#allocation2 + $0x90] sm:$0xff] %v5987_v0  ;;  %5289 = vmatprep.subr.bf16.mxu0 %v6243_v18  ;;  %4784 = vmatprep.mubr.f32.mxu0 %v6250_v27  ;;  %v6255_v30 = vld [vmem:[%s6171_s29 + $0x8] sm:$0xff]  ;;  %v6259_v31 = vld [vmem:[%s6171_s29 + $0x10] sm:$0xff]  ;;  %v6267_v34 = vpack.c.bf16 %v1819_v29, %v1818_v28  ;;  %p5861_p7 = pnand %p5860_p3, %p5854_p8 }
  0x65   : > { %298 = vst [vmem:[#allocation2 + $0x98] sm:$0xff] %v5987_v0  ;;  %299 = vst [vmem:[#allocation2 + $0xa0] sm:$0x3] %v5987_v0  ;;  %v6264_v33 = vld [vmem:[%s6171_s29 + $0x18] sm:$0xff]  ;;  %v408_v35 = vld [vmem:[#allocation7 + $0x50] sm:$0xff] }
  0x66   : > { %300 = vst [vmem:[#allocation2 + $0xa8] sm:$0xff] %v5987_v0  ;;  %301 = vst [vmem:[#allocation2 + $0xb0] sm:$0xff] %v5987_v0  ;;  %5163 = vmatpush3.bf16.msra.mxu1 %v5160_v17  ;;  %v409_v36 = vld [vmem:[#allocation7 + $0x58] sm:$0xff]  ;;  %v6271_v37 = vld [vmem:[%s6171_s29 + $0x20] sm:$0xff] }
  0x67   : > { %302 = vst [vmem:[#allocation2 + $0xb8] sm:$0x3] %v5987_v0  ;;  %303 = vst [vmem:[#allocation2 + $0xc0] sm:$0xff] %v5987_v0  ;;  %5291 = vmatpush3.bf16.msra.mxu0 %v6243_v18  ;;  %5165 = vmatprep.subr.bf16.mxu1 %v5164_v23  ;;  %v1820_v38 = vld [vmem:[#allocation7 + $0x250] sm:$0xff]  ;;  %v1821_v39 = vld [vmem:[#allocation7 + $0x258] sm:$0xff]  ;;  %v5172_v43 = vpack.c.bf16 %v409_v36, %v408_v35 }
  0x68   : > { %304 = vst [vmem:[#allocation2 + $0xc8] sm:$0xff] %v5987_v0  ;;  %305 = vst [vmem:[#allocation2 + $0xd0] sm:$0x3] %v5987_v0  ;;  %5293 = vmatprep.subr.bf16.mxu0 %v6247_v24  ;;  %v6275_v40 = vld [vmem:[%s6171_s29 + $0x28] sm:$0xff]  ;;  %v6279_v41 = vld [vmem:[%s6171_s29 + $0x30] sm:$0xff]  ;;  %v6291_v45 = vpack.c.bf16 %v1821_v39, %v1820_v38 }
  0x69   : > { %306 = vst [vmem:[#allocation2 + $0xd8] sm:$0xff] %v5987_v0  ;;  %307 = vst [vmem:[#allocation2 + $0xe0] sm:$0xff] %v5987_v0  ;;  %v6282_v42 = vld [vmem:[%s6171_s29 + $0x38] sm:$0xff]  ;;  %v6288_v44 = vld [vmem:[%s6171_s29 + $0x40] sm:$0xff] }
  0x6a   : > { %308 = vst [vmem:[#allocation2 + $0xe8] sm:$0x3] %v5987_v0  ;;  %309 = vst [vmem:[#allocation2 + $0xf0] sm:$0xff] %v5987_v0  ;;  %5167 = vmatpush3.bf16.msra.mxu1 %v5164_v23  ;;  %v410_v46 = vld [vmem:[#allocation7 + $0x60] sm:$0xff]  ;;  %v411_v47 = vld [vmem:[#allocation7 + $0x68] sm:$0xff] }
  0x6b   : > { %310 = vst [vmem:[#allocation2 + $0xf8] sm:$0xff] %v5987_v0  ;;  %311 = vst [vmem:[#allocation2 + $0x100] sm:$0x3] %v5987_v0  ;;  %5295 = vmatpush3.bf16.msra.mxu0 %v6247_v24  ;;  %5169 = vmatprep.subr.bf16.mxu1 %v5168_v32  ;;  %v6295_v48 = vld [vmem:[%s6171_s29 + $0x48] sm:$0xff]  ;;  %v1822_v49 = vld [vmem:[#allocation7 + $0x260] sm:$0xff]  ;;  %v5176_v53 = vpack.c.bf16 %v411_v47, %v410_v46 }
  0x6c   : > { %312 = vst [vmem:[#allocation2 + $0x108] sm:$0xff] %v5987_v0  ;;  %313 = vst [vmem:[#allocation2 + $0x110] sm:$0xff] %v5987_v0  ;;  %5297 = vmatprep.subr.bf16.mxu0 %v6267_v34  ;;  %v1823_v50 = vld [vmem:[#allocation7 + $0x268] sm:$0xff]  ;;  %v6299_v51 = vld [vmem:[%s6171_s29 + $0x50] sm:$0xff] }
  0x6d   : > { %314 = vst [vmem:[#allocation2 + $0x118] sm:$0x3] %v5987_v0  ;;  %315 = vst [vmem:[#allocation2 + $0x120] sm:$0xff] %v5987_v0  ;;  %v6302_v52 = vld [vmem:[%s6171_s29 + $0x58] sm:$0xff]  ;;  %v6308_v54 = vpack.c.bf16 %v1823_v50, %v1822_v49  ;;  %v412_v55 = vld [vmem:[#allocation7 + $0x70] sm:$0xff] }
  0x6e   : > { %316 = vst [vmem:[#allocation2 + $0x128] sm:$0xff] %v5987_v0  ;;  %317 = vst [vmem:[#allocation2 + $0x130] sm:$0x3] %v5987_v0  ;;  %5171 = vmatpush3.bf16.msra.mxu1 %v5168_v32  ;;  %v413_v56 = vld [vmem:[#allocation7 + $0x78] sm:$0xff]  ;;  %v6311_v57 = vld [vmem:[%s6171_s29 + $0x60] sm:$0xff] }
  0x6f   : > { %318 = vst [vmem:[#allocation2 + $0x138] sm:$0xff] %v5987_v0  ;;  %319 = vst [vmem:[#allocation2 + $0x140] sm:$0xff] %v5987_v0  ;;  %5299 = vmatpush3.bf16.msra.mxu0 %v6267_v34  ;;  %5173 = vmatprep.subr.bf16.mxu1 %v5172_v43  ;;  %v1824_v58 = vld [vmem:[#allocation7 + $0x270] sm:$0xff]  ;;  %v1825_v59 = vld [vmem:[#allocation7 + $0x278] sm:$0xff]  ;;  %v5180_v61 = vpack.c.bf16 %v413_v56, %v412_v55 }
  0x70   : > { %320 = vst [vmem:[#allocation2 + $0x148] sm:$0x3] %v5987_v0  ;;  %321 = vst [vmem:[#allocation2 + $0x150] sm:$0xff] %v5987_v0  ;;  %5301 = vmatprep.subr.bf16.mxu0 %v6291_v45  ;;  %v6315_v60 = vld [vmem:[%s6171_s29 + $0x68] sm:$0xff]  ;;  %v6320_v62 = vld [vmem:[%s6171_s29 + $0x70] sm:$0xff]  ;;  %v6323_v63 = vpack.c.bf16 %v1825_v59, %v1824_v58 }
  0x71   : > { %322 = vst [vmem:[#allocation2 + $0x158] sm:$0xff] %v5987_v0  ;;  %323 = vst [vmem:[#allocation2 + $0x160] sm:$0x3] %v5987_v0  ;;  %v703_v1 = vld [vmem:[#allocation7 + $0x80] sm:$0xff]  ;;  %v704_v2 = vld [vmem:[#allocation7 + $0x88] sm:$0xff] }
  0x72   : > { %324 = vst [vmem:[#allocation2 + $0x168] sm:$0xff] %v5987_v0  ;;  %325 = vst [vmem:[#allocation2 + $0x170] sm:$0xff] %v5987_v0  ;;  %5175 = vmatpush3.bf16.msra.mxu1 %v5172_v43  ;;  %v6327_v3 = vld [vmem:[%s6171_s29 + $0x78] sm:$0xff]  ;;  %v2179_v4 = vld [vmem:[#allocation7 + $0x280] sm:$0xff]  ;;  %v5184_v6 = vpack.c.bf16 %v704_v2, %v703_v1 }
  0x73   : > { %326 = vst [vmem:[#allocation2 + $0x178] sm:$0x3] %v5987_v0  ;;  %327 = vst [vmem:[#allocation2 + $0x180] sm:$0xff] %v5987_v0  ;;  %5303 = vmatpush3.bf16.msra.mxu0 %v6291_v45  ;;  %5177 = vmatprep.subr.bf16.mxu1 %v5176_v53  ;;  %v2180_v5 = vld [vmem:[#allocation7 + $0x288] sm:$0xff]  ;;  %v2181_v9 = vld [vmem:[#allocation7 + $0x290] sm:$0xff] }
  0x74   : > { %328 = vst [vmem:[#allocation2 + $0x188] sm:$0xff] %v5987_v0  ;;  %329 = vst [vmem:[#allocation2 + $0x190] sm:$0x3] %v5987_v0  ;;  %5305 = vmatprep.subr.bf16.mxu0 %v6308_v54  ;;  %v5312_v7 = vpack.c.bf16 %v2180_v5, %v2179_v4  ;;  %v6333_v10 = vld [vmem:[%s6171_s29 + $0x80] sm:$0xff]  ;;  %v2182_v11 = vld [vmem:[#allocation7 + $0x298] sm:$0xff] }
  0x75   : > { %330 = vst [vmem:[#allocation2 + $0x198] sm:$0xff] %v5987_v0  ;;  %331 = vst [vmem:[#allocation2 + $0x1a0] sm:$0xff] %v5987_v0  ;;  %v705_v12 = vld [vmem:[#allocation7 + $0x90] sm:$0xff]  ;;  %v6337_v14 = vld [vmem:[%s6171_s29 + $0x88] sm:$0xff]  ;;  %v5316_v20 = vpack.c.bf16 %v2182_v11, %v2181_v9 }
  0x76   : > { %332 = vst [vmem:[#allocation2 + $0x1a8] sm:$0x3] %v5987_v0  ;;  %6975 = vst [vmem:[#allocation17_spill] sm:$0xff] %v6236_v8  ;;  %5179 = vmatpush3.bf16.msra.mxu1 %v5176_v53  ;;  %v706_v15 = vld [vmem:[#allocation7 + $0x98] sm:$0xff]  ;;  %v6341_v16 = vld [vmem:[%s6171_s29 + $0x90] sm:$0xff] }
  0x77   : > { %6976 = vst [vmem:[#allocation18_spill] sm:$0xff] %v6238_v13  ;;  %6977 = vst [vmem:[#allocation19_spill] sm:$0xff] %v6243_v18  ;;  %5307 = vmatpush3.bf16.msra.mxu0 %v6308_v54  ;;  %5181 = vmatprep.subr.bf16.mxu1 %v5180_v61  ;;  %v6344_v17 = vld [vmem:[%s6171_s29 + $0x98] sm:$0xff]  ;;  %v2183_v21 = vld [vmem:[#allocation7 + $0x2a0] sm:$0xff]  ;;  %v5188_v23 = vpack.c.bf16 %v706_v15, %v705_v12 }
  0x78   : > { %6978 = vst [vmem:[#allocation20_spill] sm:$0xff] %v6247_v24  ;;  %334 = vst [vmem:[#allocation2 + $0x19] sm:$0xff] %v6250_v27  ;;  %5309 = vmatprep.subr.bf16.mxu0 %v6323_v63  ;;  %v2184_v22 = vld [vmem:[#allocation7 + $0x2a8] sm:$0xff]  ;;  %v707_v25 = vld [vmem:[#allocation7 + $0xa0] sm:$0xff] }
  0x79   : > { %335 = vst [vmem:[#allocation2 + $0x21] sm:$0xff] %v6255_v30  ;;  %336 = vst [vmem:[#allocation2 + $0x31] sm:$0xff] %v6259_v31  ;;  %v708_v26 = vld [vmem:[#allocation7 + $0xa8] sm:$0xff]  ;;  %v6351_v28 = vld [vmem:[%s6171_s29 + $0xa0] sm:$0xff]  ;;  %v5320_v38 = vpack.c.bf16 %v2184_v22, %v2183_v21 }
  0x7a   : > { %6979 = vst [vmem:[#allocation21_spill] sm:$0xff] %v6267_v34  ;;  %337 = vst [vmem:[#allocation2 + $0x39] sm:$0xff] %v6264_v33  ;;  %5183 = vmatpush3.bf16.msra.mxu1 %v5180_v61  ;;  %v6356_v32 = vld [vmem:[%s6171_s29 + $0xa8] sm:$0xff]  ;;  %v6359_v35 = vld [vmem:[%s6171_s29 + $0xb0] sm:$0xff]  ;;  %v5192_v47 = vpack.c.bf16 %v708_v26, %v707_v25 }
  0x7b   : > { %338 = vst [vmem:[#allocation2 + $0x49] sm:$0xff] %v6271_v37  ;;  %339 = vst [vmem:[#allocation2 + $0x51] sm:$0xff] %v6275_v40  ;;  %5311 = vmatpush3.bf16.msra.mxu0 %v6323_v63  ;;  %5185 = vmatprep.subr.bf16.mxu1 %v5184_v6  ;;  %v2185_v43 = vld [vmem:[#allocation7 + $0x2b0] sm:$0xff]  ;;  %v2186_v46 = vld [vmem:[#allocation7 + $0x2b8] sm:$0xff] }
  0x7c   : > { %340 = vst [vmem:[#allocation2 + $0x61] sm:$0xff] %v6279_v41  ;;  %341 = vst [vmem:[#allocation2 + $0x69] sm:$0xff] %v6282_v42  ;;  %5313 = vmatprep.subr.bf16.mxu0 %v5312_v7  ;;  %v709_v49 = vld [vmem:[#allocation7 + $0xb0] sm:$0xff]  ;;  %v710_v50 = vld [vmem:[#allocation7 + $0xb8] sm:$0xff]  ;;  %v5324_v58 = vpack.c.bf16 %v2186_v46, %v2185_v43 }
  0x7d   : > { %6980 = vst [vmem:[#allocation22_spill] sm:$0xff] %v6291_v45  ;;  %342 = vst [vmem:[#allocation2 + $0x79] sm:$0xff] %v6288_v44  ;;  %4465 = vmatmul.mubr.f32.vlgmr.msra.gmra.mrb[0].mxu1 %v5987_v0  ;;  %v6366_v0 = vld [vmem:[%s6171_s29 + $0xb8] sm:$0xff]  ;;  %v6375_v53 = vld [vmem:[%s6171_s29 + $0xc0] sm:$0xff]  ;;  %v5196_v4 = vpack.c.bf16 %v710_v50, %v709_v49 }
  0x7e   : > { %343 = vst [vmem:[#allocation2 + $0x81] sm:$0xff] %v6295_v48  ;;  %344 = vst [vmem:[#allocation2 + $0x91] sm:$0xff] %v6299_v51  ;;  %4785 = vmatmul.mubr.f32.vlgmr.msra.gmra.mrb[0].mxu0 %v6255_v30  ;;  %5187 = vmatpush3.bf16.msra.mxu1 %v5184_v6  ;;  %v6382_v56 = vld [vmem:[%s6171_s29 + $0xc8] sm:$0xff]  ;;  %v6386_v59 = vld [vmem:[%s6171_s29 + $0xd0] sm:$0xff] }
  0x7f   : > { %345 = vst [vmem:[#allocation2 + $0x99] sm:$0xff] %v6302_v52  ;;  %6981 = vst [vmem:[#allocation23_spill] sm:$0xff] %v6308_v54  ;;  %v368_v19 = vld [vmem:[#allocation2 + $0x18] sm:$0xff]  ;;  %5315 = vmatpush3.bf16.msra.mxu0 %v5312_v7  ;;  %4787 = vmatprep.mubr.f32.mxu0 %v6259_v31  ;;  %v6389_v61 = vld [vmem:[%s6171_s29 + $0xd8] sm:$0xff] }
  0x80   : > { %346 = vst [vmem:[#allocation2 + $0xa9] sm:$0xff] %v6311_v57  ;;  %347 = vst [vmem:[#allocation2 + $0xb1] sm:$0xff] %v6315_v60  ;;  %v369_v29 = vld [vmem:[#allocation2 + $0x20] sm:$0xff]  ;;  %4467 = vmatprep.mubr.f32.mxu1 %v368_v19  ;;  %v6361_v36 = vld [vmem:[#allocation2 + $0x30] sm:$0xff]  ;;  %5317 = vmatprep.subr.bf16.mxu0 %v5316_v20 }
  0x81   : > { %6982 = vst [vmem:[#allocation24_spill] sm:$0xff] %v6323_v63  ;;  %348 = vst [vmem:[#allocation2 + $0xc1] sm:$0xff] %v6320_v62  ;;  %4468 = vmatmul.mubr.f32.gmra.mrb[2].mxu1 %v369_v29  ;;  %v6370_v39 = vld [vmem:[#allocation2 + $0x38] sm:$0xff]  ;;  %5189 = vmatprep.subr.bf16.mxu1 %v5188_v23  ;;  %v2187_v1 = vld [vmem:[#allocation7 + $0x2c0] sm:$0xff] }
  0x82   : > { %349 = vst [vmem:[#allocation2 + $0xc9] sm:$0xff] %v6327_v3  ;;  %350 = vst [vmem:[#allocation2 + $0xd9] sm:$0xff] %v6333_v10  ;;  %4788 = vmatmul.mubr.f32.gmra.mrb[2].mxu0 %v6264_v33  ;;  %4470 = vmatprep.mubr.f32.mxu1 %v6361_v36  ;;  %v6378_v55 = vld [vmem:[#allocation2 + $0x48] sm:$0xff]  ;;  %v2188_v2 = vld [vmem:[#allocation7 + $0x2c8] sm:$0xff] }
  0x83   : > { %351 = vst [vmem:[#allocation2 + $0xe1] sm:$0xff] %v6337_v14  ;;  %352 = vst [vmem:[#allocation2 + $0xf1] sm:$0xff] %v6341_v16  ;;  %5319 = vmatpush3.bf16.msra.mxu0 %v5316_v20  ;;  %4790 = vmatprep.mubr.f32.mxu0 %v6271_v37  ;;  %v6396_v5 = vld [vmem:[#allocation2 + $0x50] sm:$0xff]  ;;  %v712_v7 = vld [vmem:[#allocation7 + $0xc8] sm:$0xff]  ;;  %v5328_v11 = vpack.c.bf16 %v2188_v2, %v2187_v1 }
  0x84   : > { %353 = vst [vmem:[#allocation2 + $0xf9] sm:$0xff] %v6344_v17  ;;  %354 = vst [vmem:[#allocation2 + $0x109] sm:$0xff] %v6351_v28  ;;  %5321 = vmatprep.subr.bf16.mxu0 %v5320_v38  ;;  %5191 = vmatpush3.bf16.msra.mxu1 %v5188_v23  ;;  %v711_v6 = vld [vmem:[#allocation7 + $0xc0] sm:$0xff]  ;;  %v6399_v9 = vld [vmem:[#allocation2 + $0x60] sm:$0xff] }
  0x85   : > { %355 = vst [vmem:[#allocation2 + $0x111] sm:$0xff] %v6356_v32  ;;  %356 = vst [vmem:[#allocation2 + $0x121] sm:$0xff] %v6359_v35  ;;  %4471 = vmatmul.mubr.f32.gmra.mrb[4].mxu1 %v6370_v39  ;;  %5193 = vmatprep.subr.bf16.mxu1 %v5192_v47  ;;  %v6402_v12 = vld [vmem:[%s6171_s29 + $0xe0] sm:$0xff]  ;;  %v6405_v15 = vld [vmem:[%s6171_s29 + $0xe8] sm:$0xff]  ;;  %v5200_v21 = vpack.c.bf16 %v712_v7, %v711_v6 }
  0x86   : > { %357 = vst [vmem:[#allocation2 + $0x129] sm:$0xff] %v6366_v0  ;;  %358 = vst [vmem:[#allocation2 + $0x139] sm:$0xff] %v6375_v53  ;;  %4791 = vmatmul.mubr.f32.gmra.mrb[4].mxu0 %v6275_v40  ;;  %4473 = vmatprep.mubr.f32.mxu1 %v6378_v55  ;;  %v2189_v19 = vld [vmem:[#allocation7 + $0x2d0] sm:$0xff]  ;;  %v2190_v20 = vld [vmem:[#allocation7 + $0x2d8] sm:$0xff] }
  0x87   : > { %359 = vst [vmem:[#allocation2 + $0x141] sm:$0xff] %v6382_v56  ;;  %360 = vst [vmem:[#allocation2 + $0x151] sm:$0xff] %v6386_v59  ;;  %5323 = vmatpush3.bf16.msra.mxu0 %v5320_v38  ;;  %4793 = vmatprep.mubr.f32.mxu0 %v6279_v41  ;;  %v6412_v22 = vld [vmem:[#allocation2 + $0x68] sm:$0xff]  ;;  %v713_v23 = vld [vmem:[#allocation7 + $0xd0] sm:$0xff]  ;;  %v5332_v29 = vpack.c.bf16 %v2190_v20, %v2189_v19 }
  0x88   : > { %361 = vst [vmem:[#allocation2 + $0x159] sm:$0xff] %v6389_v61  ;;  %5325 = vmatprep.subr.bf16.mxu0 %v5324_v58  ;;  %5195 = vmatpush3.bf16.msra.mxu1 %v5192_v47  ;;  %362 = vst [vmem:[#allocation2 + $0x169] sm:$0xff] %v6402_v12  ;;  %v714_v25 = vld [vmem:[#allocation7 + $0xd8] sm:$0xff]  ;;  %v6415_v26 = vld [vmem:[#allocation2 + $0x78] sm:$0xff] }
  0x89   : > { %4474 = vmatmul.mubr.f32.gmra.mrb[6].mxu1 %v6396_v5  ;;  %5197 = vmatprep.subr.bf16.mxu1 %v5196_v4  ;;  %363 = vst [vmem:[#allocation2 + $0x171] sm:$0xff] %v6405_v15  ;;  %v2191_v38 = vld [vmem:[#allocation7 + $0x2e0] sm:$0xff]  ;;  %v2192_v43 = vld [vmem:[#allocation7 + $0x2e8] sm:$0xff]  ;;  %v5204_v46 = vpack.c.bf16 %v714_v25, %v713_v23  ;;  %v6420_v47 = vld [vmem:[#allocation2 + $0x80] sm:$0xff] }
  0x8a   : > { %4794 = vmatmul.mubr.f32.gmra.mrb[6].mxu0 %v6282_v42  ;;  %4476 = vmatprep.mubr.f32.mxu1 %v6399_v9  ;;  %v715_v49 = vld [vmem:[#allocation7 + $0xe0] sm:$0xff]  ;;  %v716_v50 = vld [vmem:[#allocation7 + $0xe8] sm:$0xff]  ;;  %v5336_v1 = vpack.c.bf16 %v2192_v43, %v2191_v38  ;;  %v2193_v2 = vld [vmem:[#allocation7 + $0x2f0] sm:$0xff] }
  0x8b   : > { %5327 = vmatpush3.bf16.msra.mxu0 %v5324_v58  ;;  %4796 = vmatprep.mubr.f32.mxu0 %v6288_v44  ;;  %v6423_v58 = vld [vmem:[#allocation2 + $0x90] sm:$0xff]  ;;  %v5208_v6 = vpack.c.bf16 %v716_v50, %v715_v49  ;;  %v6428_v7 = vld [vmem:[#allocation2 + $0x98] sm:$0xff]  ;;  %v718_v19 = vld [vmem:[#allocation7 + $0xf8] sm:$0xff] }
  0x8c   : > { %5329 = vmatprep.subr.bf16.mxu0 %v5328_v11  ;;  %5199 = vmatpush3.bf16.msra.mxu1 %v5196_v4  ;;  %v2194_v4 = vld [vmem:[#allocation7 + $0x2f8] sm:$0xff]  ;;  %v2549_v23 = vld [vmem:[#allocation7 + $0x300] sm:$0xff]  ;;  %v2550_v38 = vld [vmem:[#allocation7 + $0x308] sm:$0xff] }
  0x8d   : > { %4477 = vmatmul.mubr.f32.gmra.mrb[8].mxu1 %v6412_v22  ;;  %5201 = vmatprep.subr.bf16.mxu1 %v5200_v21  ;;  %v6431_v20 = vld [vmem:[#allocation2 + $0xa8] sm:$0xff]  ;;  %v6434_v25 = vld [vmem:[#allocation2 + $0xb0] sm:$0xff]  ;;  %v6439_v50 = vld [vmem:[%s6171_s29 + $0xf0] sm:$0xff] }
  0x8e   : > { %4797 = vmatmul.mubr.f32.gmra.mrb[8].mxu0 %v6295_v48  ;;  %4479 = vmatprep.mubr.f32.mxu1 %v6415_v26  ;;  %v1072_v49 = vld [vmem:[#allocation7 + $0x100] sm:$0xff]  ;;  %6983 = vst [vmem:[#allocation25_spill] sm:$0xff] %v6439_v50  ;;  %v6442_v63 = vld [vmem:[%s6171_s29 + $0xf8] sm:$0xff]  ;;  %364 = vst [vmem:[#allocation2 + $0x181] sm:$0xff] %v6439_v50 }
  0x8f   : > { %5331 = vmatpush3.bf16.msra.mxu0 %v5328_v11  ;;  %4799 = vmatprep.mubr.f32.mxu0 %v6299_v51  ;;  %v717_v11 = vld [vmem:[#allocation7 + $0xf0] sm:$0xff]  ;;  %6984 = vst [vmem:[#allocation26_spill] sm:$0xff] %v6442_v63  ;;  %365 = vst [vmem:[#allocation2 + $0x189] sm:$0xff] %v6442_v63  ;;  %v6474_v45 = vld [vmem:[#allocation2 + $0xf0] sm:$0xff] }
  0x90   : > { %5333 = vmatprep.subr.bf16.mxu0 %v5332_v29  ;;  %5203 = vmatpush3.bf16.msra.mxu1 %v5200_v21  ;;  %v5340_v21 = vpack.c.bf16 %v2194_v4, %v2193_v2  ;;  %v5212_v43 = vpack.c.bf16 %v718_v19, %v717_v11  ;;  %v6449_v2 = vld [vmem:[#allocation2 + $0x1a] sm:$0xff]  ;;  %v5344_v4 = vpack.c.bf16 %v2550_v38, %v2549_v23  ;;  %v2552_v19 = vld [vmem:[#allocation7 + $0x318] sm:$0xff] }
  0x91   : > { %4480 = vmatmul.mubr.f32.gmra.mrb[10].mxu1 %v6420_v47  ;;  %5205 = vmatprep.subr.bf16.mxu1 %v5204_v46  ;;  %v2551_v11 = vld [vmem:[#allocation7 + $0x310] sm:$0xff]  ;;  %v6461_v23 = vld [vmem:[#allocation2 + $0xd8] sm:$0xff]  ;;  %v2556_v34 = vld [vmem:[#allocation7 + $0x338] sm:$0xff] }
  0x92   : > { %4800 = vmatmul.mubr.f32.gmra.mrb[10].mxu0 %v6302_v52  ;;  %4482 = vmatprep.mubr.f32.mxu1 %v6423_v58  ;;  %v6459_v63 = vld [vmem:[#allocation2 + $0x22] sm:$0xff]  ;;  %v5348_v38 = vpack.c.bf16 %v2552_v19, %v2551_v11  ;;  %v6472_v50 = vld [vmem:[#allocation2 + $0x3a] sm:$0xff] }
  0x93   : > { %5335 = vmatpush3.bf16.msra.mxu0 %v5332_v29  ;;  %4802 = vmatprep.mubr.f32.mxu0 %v6311_v57  ;;  %v1073_v29 = vld [vmem:[#allocation7 + $0x108] sm:$0xff]  ;;  %6985 = vst [vmem:[#allocation27_spill] sm:$0xff] %v6459_v63  ;;  %6987 = vst [vmem:[#allocation29_spill] sm:$0xff] %v6472_v50  ;;  %v2555_v19 = vld [vmem:[#allocation7 + $0x330] sm:$0xff] }
  0x94   : > { %5337 = vmatprep.subr.bf16.mxu0 %v5336_v1  ;;  %5207 = vmatpush3.bf16.msra.mxu1 %v5204_v46  ;;  %v6445_v46 = vld [vmem:[#allocation2 + $0xc0] sm:$0xff]  ;;  %v6452_v54 = vpack.c.bf16 %v1073_v29, %v1072_v49  ;;  %v2553_v49 = vld [vmem:[#allocation7 + $0x320] sm:$0xff]  ;;  %v2554_v29 = vld [vmem:[#allocation7 + $0x328] sm:$0xff] }
  0x95   : > { %4483 = vmatmul.mubr.f32.gmra.mrb[12].mxu1 %v6428_v7  ;;  %5209 = vmatprep.subr.bf16.mxu1 %v5208_v6  ;;  %v5352_v11 = vpack.c.bf16 %v2554_v29, %v2553_v49  ;;  %v6481_v24 = vld [vmem:[#allocation2 + $0xf8] sm:$0xff]  ;;  %v6486_v18 = vld [vmem:[#allocation2 + $0x108] sm:$0xff]  ;;  %v5356_v49 = vpack.c.bf16 %v2556_v34, %v2555_v19  ;;  %v2557_v29 = vld [vmem:[#allocation7 + $0x340] sm:$0xff] }
  0x96   : > { %4803 = vmatmul.mubr.f32.gmra.mrb[12].mxu0 %v6315_v60  ;;  %4485 = vmatprep.mubr.f32.mxu1 %v6431_v20  ;;  %6990 = vst [vmem:[#allocation32_spill] sm:$0xff] %v6486_v18  ;;  %v6488_v13 = vld [vmem:[#allocation2 + $0x62] sm:$0xff]  ;;  %v2558_v8 = vld [vmem:[#allocation7 + $0x348] sm:$0xff] }
  0x97   : > { %5339 = vmatpush3.bf16.msra.mxu0 %v5336_v1  ;;  %4805 = vmatprep.mubr.f32.mxu0 %v6320_v62  ;;  %v6456_v1 = vld [vmem:[#allocation2 + $0xc8] sm:$0xff]  ;;  %6991 = vst [vmem:[#allocation33_spill] sm:$0xff] %v6488_v13  ;;  %v5360_v34 = vpack.c.bf16 %v2558_v8, %v2557_v29  ;;  %v2559_v19 = vld [vmem:[#allocation7 + $0x350] sm:$0xff]  ;;  %v2561_v29 = vld [vmem:[#allocation7 + $0x360] sm:$0xff] }
  0x98   : > { %5341 = vmatprep.subr.bf16.mxu0 %v5340_v21  ;;  %5211 = vmatpush3.bf16.msra.mxu1 %v5208_v6  ;;  %v6463_v6 = vld [vmem:[#allocation2 + $0x32] sm:$0xff] }
  0x99   : > { %4486 = vmatmul.mubr.f32.gmra.mrb[14].mxu1 %v6434_v25  ;;  %5213 = vmatprep.subr.bf16.mxu1 %v5212_v43  ;;  %6986 = vst [vmem:[#allocation28_spill] sm:$0xff] %v6463_v6 }
  0x9a   : > { %4806 = vmatmul.mubr.f32.gmra.mrb[14].mxu0 %v6327_v3  ;;  %4488 = vmatprep.mubr.f32.mxu1 %v6445_v46 }
  0x9b   : > { %5343 = vmatpush3.bf16.msra.mxu0 %v5340_v21  ;;  %4864 = vmatprep.mubr.f32.mxu0 %v6449_v2  ;;  %v6469_v21 = vld [vmem:[#allocation2 + $0xe0] sm:$0xff] }
  0x9c   : > { %5345 = vmatprep.subr.bf16.mxu0 %v5344_v4  ;;  %5215 = vmatpush3.bf16.msra.mxu1 %v5212_v43  ;;  %v6476_v43 = vld [vmem:[#allocation2 + $0x4a] sm:$0xff] }
  0x9d   : > { %4489 = vmatmul.mubr.f32.gmra.mrb[16].mxu1 %v6456_v1  ;;  %5217 = vmatprep.subr.bf16.mxu1 %v6452_v54  ;;  %6988 = vst [vmem:[#allocation30_spill] sm:$0xff] %v6476_v43 }
  0x9e   : > { %4865 = vmatmul.mubr.f32.vlgmr.msra.gmra.mrb[0].mxu0 %v6459_v63  ;;  %4491 = vmatprep.mubr.f32.mxu1 %v6461_v23  ;;  %v2560_v63 = vld [vmem:[#allocation7 + $0x358] sm:$0xff] }
  0x9f   : > { %5347 = vmatpush3.bf16.msra.mxu0 %v5344_v4  ;;  %4867 = vmatprep.mubr.f32.mxu0 %v6463_v6  ;;  %v6484_v4 = vld [vmem:[#allocation2 + $0x52] sm:$0xff]  ;;  %v6500_v6 = vld [vmem:[#allocation2 + $0x7a] sm:$0xff]  ;;  %v5364_v8 = vpack.c.bf16 %v2560_v63, %v2559_v19 }
  0xa0   : > { %5349 = vmatprep.subr.bf16.mxu0 %v5348_v38  ;;  %6989 = vst [vmem:[#allocation31_spill] sm:$0xff] %v6484_v4  ;;  %6995 = vst [vmem:[#allocation37_spill] sm:$0xff] %v6500_v6  ;;  %v2563_v19 = vld [vmem:[#allocation7 + $0x370] sm:$0xff] }
  0xa1   : > { %4492 = vmatmul.mubr.f32.gmra.mrb[18].mxu1 %v6469_v21 }
  0xa2   : > { %4868 = vmatmul.mubr.f32.gmra.mrb[2].mxu0 %v6472_v50  ;;  %4494 = vmatprep.mubr.f32.mxu1 %v6474_v45  ;;  %v6493_v50 = vld [vmem:[#allocation2 + $0x110] sm:$0xff] }
  0xa3   : > { %4870 = vmatprep.mubr.f32.mxu0 %v6476_v43  ;;  %5351 = vmatpush3.bf16.msra.mxu0 %v5348_v38  ;;  %6992 = vst [vmem:[#allocation34_spill] sm:$0xff] %v6493_v50  ;;  %v6496_v43 = vld [vmem:[#allocation2 + $0x6a] sm:$0xff]  ;;  %v6498_v38 = vld [vmem:[#allocation2 + $0x120] sm:$0xff] }
  0xa4   : > { %5353 = vmatprep.subr.bf16.mxu0 %v5352_v11  ;;  %6993 = vst [vmem:[#allocation35_spill] sm:$0xff] %v6496_v43  ;;  %6994 = vst [vmem:[#allocation36_spill] sm:$0xff] %v6498_v38 }
  0xa5   : > { %4495 = vmatmul.mubr.f32.gmra.mrb[20].mxu1 %v6481_v24 }
  0xa6   : > { %4871 = vmatmul.mubr.f32.gmra.mrb[4].mxu0 %v6484_v4  ;;  %4497 = vmatprep.mubr.f32.mxu1 %v6486_v18  ;;  %v6505_v4 = vld [vmem:[#allocation2 + $0x128] sm:$0xff]  ;;  %v6510_v18 = vld [vmem:[#allocation2 + $0x138] sm:$0xff] }
  0xa7   : > { %4873 = vmatprep.mubr.f32.mxu0 %v6488_v13  ;;  %5355 = vmatpush3.bf16.msra.mxu0 %v5352_v11  ;;  %6996 = vst [vmem:[#allocation38_spill] sm:$0xff] %v6505_v4  ;;  %v6508_v13 = vld [vmem:[#allocation2 + $0x82] sm:$0xff]  ;;  %6998 = vst [vmem:[#allocation40_spill] sm:$0xff] %v6510_v18  ;;  %v6512_v11 = vld [vmem:[#allocation2 + $0x92] sm:$0xff] }
  0xa8   : > { %5357 = vmatprep.subr.bf16.mxu0 %v5356_v49  ;;  %6997 = vst [vmem:[#allocation39_spill] sm:$0xff] %v6508_v13  ;;  %6999 = vst [vmem:[#allocation41_spill] sm:$0xff] %v6512_v11 }
  0xa9   : > { %4498 = vmatmul.mubr.f32.gmra.mrb[22].mxu1 %v6493_v50  ;;  %v2562_v50 = vld [vmem:[#allocation7 + $0x368] sm:$0xff] }
  0xaa   : > { %4874 = vmatmul.mubr.f32.gmra.mrb[6].mxu0 %v6496_v43  ;;  %4500 = vmatprep.mubr.f32.mxu1 %v6498_v38  ;;  %v6517_v43 = vld [vmem:[#allocation2 + $0x140] sm:$0xff]  ;;  %v6522_v38 = vld [vmem:[#allocation2 + $0x150] sm:$0xff]  ;;  %v5368_v63 = vpack.c.bf16 %v2562_v50, %v2561_v29 }
  0xab   : > { %4876 = vmatprep.mubr.f32.mxu0 %v6500_v6  ;;  %5359 = vmatpush3.bf16.msra.mxu0 %v5356_v49  ;;  %7000 = vst [vmem:[#allocation42_spill] sm:$0xff] %v6517_v43  ;;  %v6520_v6 = vld [vmem:[#allocation2 + $0x9a] sm:$0xff]  ;;  %7002 = vst [vmem:[#allocation44_spill] sm:$0xff] %v6522_v38  ;;  %v6524_v49 = vld [vmem:[#allocation2 + $0xaa] sm:$0xff] }
  0xac   : > { %5361 = vmatprep.subr.bf16.mxu0 %v5360_v34  ;;  %7001 = vst [vmem:[#allocation43_spill] sm:$0xff] %v6520_v6  ;;  %7003 = vst [vmem:[#allocation45_spill] sm:$0xff] %v6524_v49  ;;  %v2918_v29 = vld [vmem:[#allocation7 + $0x380] sm:$0xff] }
  0xad   : > { %4501 = vmatmul.mubr.f32.gmra.mrb[24].mxu1 %v6505_v4  ;;  %v2564_v4 = vld [vmem:[#allocation7 + $0x378] sm:$0xff] }
  0xae   : > { %4877 = vmatmul.mubr.f32.gmra.mrb[8].mxu0 %v6508_v13  ;;  %4503 = vmatprep.mubr.f32.mxu1 %v6510_v18  ;;  %v6529_v13 = vld [vmem:[#allocation2 + $0x158] sm:$0xff]  ;;  %v6534_v18 = vld [vmem:[#allocation2 + $0x168] sm:$0xff]  ;;  %v5372_v50 = vpack.c.bf16 %v2564_v4, %v2563_v19  ;;  %v1074_v19 = vld [vmem:[#allocation7 + $0x110] sm:$0xff] }
  0xaf   : > { %4879 = vmatprep.mubr.f32.mxu0 %v6512_v11  ;;  %5363 = vmatpush3.bf16.msra.mxu0 %v5360_v34  ;;  %7004 = vst [vmem:[#allocation46_spill] sm:$0xff] %v6529_v13  ;;  %v6532_v11 = vld [vmem:[#allocation2 + $0xb2] sm:$0xff]  ;;  %7006 = vst [vmem:[#allocation48_spill] sm:$0xff] %v6534_v18  ;;  %v6536_v34 = vld [vmem:[#allocation2 + $0xc2] sm:$0xff] }
  0xb0   : > { %5365 = vmatprep.subr.bf16.mxu0 %v5364_v8  ;;  %7005 = vst [vmem:[#allocation47_spill] sm:$0xff] %v6532_v11  ;;  %7007 = vst [vmem:[#allocation49_spill] sm:$0xff] %v6536_v34 }
  0xb1   : > { %4504 = vmatmul.mubr.f32.gmra.mrb[26].mxu1 %v6517_v43  ;;  %v2919_v43 = vld [vmem:[#allocation7 + $0x388] sm:$0xff] }
  0xb2   : > { %4880 = vmatmul.mubr.f32.gmra.mrb[10].mxu0 %v6520_v6  ;;  %4506 = vmatprep.mubr.f32.mxu1 %v6522_v38  ;;  %v6541_v6 = vld [vmem:[#allocation2 + $0x170] sm:$0xff]  ;;  %v671_v38 = vld [vmem:[#allocation2 + $0x1] sm:$0xff]  ;;  %v6548_v4 = vpack.c.bf16 %v2919_v43, %v2918_v29  ;;  %v1077_v29 = vld [vmem:[#allocation7 + $0x128] sm:$0xff] }
  0xb3   : > { %4882 = vmatprep.mubr.f32.mxu0 %v6524_v49  ;;  %5367 = vmatpush3.bf16.msra.mxu0 %v5364_v8  ;;  %v6544_v49 = vld [vmem:[#allocation2 + $0xca] sm:$0xff]  ;;  %v6546_v8 = vld [vmem:[#allocation2 + $0xda] sm:$0xff] }
  0xb4   : > { %5369 = vmatprep.subr.bf16.mxu0 %v5368_v63  ;;  %7008 = vst [vmem:[#allocation50_spill] sm:$0xff] %v6546_v8  ;;  %v1076_v43 = vld [vmem:[#allocation7 + $0x120] sm:$0xff] }
  0xb5   : > { %4507 = vmatmul.mubr.f32.gmra.mrb[28].mxu1 %v6529_v13  ;;  %v1075_v13 = vld [vmem:[#allocation7 + $0x118] sm:$0xff] }
  0xb6   : > { %4883 = vmatmul.mubr.f32.gmra.mrb[12].mxu0 %v6532_v11  ;;  %4509 = vmatprep.mubr.f32.mxu1 %v6534_v18  ;;  %v672_v11 = vld [vmem:[#allocation2 + $0x9] sm:$0xff]  ;;  %v6555_v18 = vld [vmem:[#allocation2 + $0xf2] sm:$0xff] }
  0xb7   : > { %4885 = vmatprep.mubr.f32.mxu0 %v6536_v34  ;;  %5371 = vmatpush3.bf16.msra.mxu0 %v5368_v63  ;;  %v6553_v34 = vld [vmem:[#allocation2 + $0xe2] sm:$0xff]  ;;  %v5220_v63 = vpack.c.bf16 %v1075_v13, %v1074_v19 }
  0xb8   : > { %5373 = vmatprep.subr.bf16.mxu0 %v5372_v50  ;;  %v1078_v13 = vld [vmem:[#allocation7 + $0x130] sm:$0xff] }
  0xb9   : > { %4510 = vmatmul.mubr.f32.gmra.mrb[30].mxu1 %v6541_v6 }
  0xba   : > { %4886 = vmatmul.mubr.f32.gmra.mrb[14].mxu0 %v6544_v49  ;;  %4544 = vmatprep.mubr.f32.mxu1 %v671_v38  ;;  %v6562_v38 = vld [vmem:[#allocation2 + $0xfa] sm:$0xff] }
  0xbb   : > { %4888 = vmatprep.mubr.f32.mxu0 %v6546_v8  ;;  %5375 = vmatpush3.bf16.msra.mxu0 %v5372_v50  ;;  %v6564_v8 = vld [vmem:[#allocation2 + $0x10a] sm:$0xff]  ;;  %v5224_v50 = vpack.c.bf16 %v1077_v29, %v1076_v43  ;;  %v1081_v29 = vld [vmem:[#allocation7 + $0x148] sm:$0xff] }
  0xbc   : > { %5377 = vmatprep.subr.bf16.mxu0 %v6548_v4  ;;  %v1080_v43 = vld [vmem:[#allocation7 + $0x140] sm:$0xff] }
  0xbd   : > { %4545 = vmatmul.mubr.f32.vlgmr.msra.gmra.mrb[0].mxu1 %v672_v11  ;;  %v1079_v11 = vld [vmem:[#allocation7 + $0x138] sm:$0xff] }
  0xbe   : > { %4889 = vmatmul.mubr.f32.gmra.mrb[16].mxu0 %v6553_v34  ;;  %5219 = vmatpush3.bf16.msra.mxu1 %v6452_v54  ;;  %v6570_v54 = vld [vmem:[#allocation2 + $0x112] sm:$0xff]  ;;  %v5228_v19 = vpack.c.bf16 %v1079_v11, %v1078_v13  ;;  %v1082_v13 = vld [vmem:[#allocation7 + $0x150] sm:$0xff]  ;;  %v1083_v11 = vld [vmem:[#allocation7 + $0x158] sm:$0xff] }
  0xbf   : > { %4547 = vmatprep.mubr.f32.mxu1 %v6250_v27  ;;  %4891 = vmatprep.mubr.f32.mxu0 %v6555_v18  ;;  %v6572_v27 = vld [vmem:[#allocation2 + $0x122] sm:$0xff] }
  0xc0   : > { %5221 = vmatprep.subr.bf16.mxu1 %v5220_v63 }
  0xc1   : > { %4548 = vmatmul.mubr.f32.gmra.mrb[2].mxu1 %v6255_v30  ;;  %v6578_v30 = vld [vmem:[#allocation2 + $0x12a] sm:$0xff] }
  0xc2   : > { %4892 = vmatmul.mubr.f32.gmra.mrb[18].mxu0 %v6562_v38  ;;  %4550 = vmatprep.mubr.f32.mxu1 %v6259_v31  ;;  %v6580_v31 = vld [vmem:[#allocation2 + $0x13a] sm:$0xff] }
  0xc3   : > { %4894 = vmatprep.mubr.f32.mxu0 %v6564_v8  ;;  %5223 = vmatpush3.bf16.msra.mxu1 %v5220_v63  ;;  %v5232_v63 = vpack.c.bf16 %v1081_v29, %v1080_v43  ;;  %v1084_v43 = vld [vmem:[#allocation7 + $0x160] sm:$0xff]  ;;  %v1085_v29 = vld [vmem:[#allocation7 + $0x168] sm:$0xff] }
  0xc4   : > { %5225 = vmatprep.subr.bf16.mxu1 %v5224_v50 }
  0xc5   : > { %4551 = vmatmul.mubr.f32.gmra.mrb[4].mxu1 %v6264_v33  ;;  %v6586_v33 = vld [vmem:[#allocation2 + $0x142] sm:$0xff] }
  0xc6   : > { %4895 = vmatmul.mubr.f32.gmra.mrb[20].mxu0 %v6570_v54  ;;  %4553 = vmatprep.mubr.f32.mxu1 %v6271_v37  ;;  %v6588_v37 = vld [vmem:[#allocation2 + $0x152] sm:$0xff] }
  0xc7   : > { %4897 = vmatprep.mubr.f32.mxu0 %v6572_v27  ;;  %5227 = vmatpush3.bf16.msra.mxu1 %v5224_v50  ;;  %7009 = vst [vmem:[#allocation51_spill] sm:$0xff] %v6588_v37  ;;  %v5236_v50 = vpack.c.bf16 %v1083_v11, %v1082_v13  ;;  %v1086_v13 = vld [vmem:[#allocation7 + $0x170] sm:$0xff]  ;;  %v1087_v11 = vld [vmem:[#allocation7 + $0x178] sm:$0xff] }
  0xc8   : > { %5229 = vmatprep.subr.bf16.mxu1 %v5228_v19 }
  0xc9   : > { %4554 = vmatmul.mubr.f32.gmra.mrb[6].mxu1 %v6275_v40  ;;  %v6594_v40 = vld [vmem:[#allocation2 + $0x15a] sm:$0xff] }
  0xca   : > { %4898 = vmatmul.mubr.f32.gmra.mrb[22].mxu0 %v6578_v30  ;;  %4556 = vmatprep.mubr.f32.mxu1 %v6279_v41  ;;  %v6596_v41 = vld [vmem:[#allocation2 + $0x16a] sm:$0xff] }
  0xcb   : > { %4900 = vmatprep.mubr.f32.mxu0 %v6580_v31  ;;  %5231 = vmatpush3.bf16.msra.mxu1 %v5228_v19  ;;  %v5240_v19 = vpack.c.bf16 %v1085_v29, %v1084_v43  ;;  %v1442_v43 = vld [vmem:[#allocation7 + $0x188] sm:$0xff]  ;;  %v2921_v29 = vld [vmem:[#allocation7 + $0x398] sm:$0xff] }
  0xcc   : > { %5233 = vmatprep.subr.bf16.mxu1 %v5232_v63 }
  0xcd   : > { %4557 = vmatmul.mubr.f32.gmra.mrb[8].mxu1 %v6282_v42  ;;  %v6602_v42 = vld [vmem:[#allocation2 + $0x172] sm:$0xff] }
  0xce   : > { %4901 = vmatmul.mubr.f32.gmra.mrb[24].mxu0 %v6586_v33  ;;  %4559 = vmatprep.mubr.f32.mxu1 %v6288_v44  ;;  %v2177_v44 = vld [vmem:[#allocation2 + $0x182] sm:$0xff] }
  0xcf   : > { %4903 = vmatprep.mubr.f32.mxu0 %v6588_v37  ;;  %5235 = vmatpush3.bf16.msra.mxu1 %v5232_v63  ;;  %v5244_v63 = vpack.c.bf16 %v1087_v11, %v1086_v13  ;;  %v1441_v37 = vld [vmem:[#allocation7 + $0x180] sm:$0xff]  ;;  %v7016_v13 = vld [vmem:[#allocation38_spill] sm:$0xff] }
  0xd0   : > { %5237 = vmatprep.subr.bf16.mxu1 %v5236_v50  ;;  %v7017_v11 = vld [vmem:[#allocation30_spill] sm:$0xff] }
  0xd1   : > { %4560 = vmatmul.mubr.f32.gmra.mrb[10].mxu1 %v6295_v48  ;;  %v2178_v48 = vld [vmem:[#allocation2 + $0x18a] sm:$0xff] }
  0xd2   : > { %4904 = vmatmul.mubr.f32.gmra.mrb[26].mxu0 %v6594_v40  ;;  %4562 = vmatprep.mubr.f32.mxu1 %v6299_v51  ;;  %v6607_v51 = vpack.c.bf16 %v1442_v43, %v1441_v37  ;;  %v1450_v37 = vld [vmem:[#allocation7 + $0x1c8] sm:$0xff]  ;;  %v7019_v43 = vld [vmem:[#allocation31_spill] sm:$0xff] }
  0xd3   : > { %4906 = vmatprep.mubr.f32.mxu0 %v6596_v41  ;;  %5239 = vmatpush3.bf16.msra.mxu1 %v5236_v50  ;;  %v2920_v50 = vld [vmem:[#allocation7 + $0x390] sm:$0xff] }
  0xd4   : > { %5241 = vmatprep.subr.bf16.mxu1 %v5240_v19 }
  0xd5   : > { %4563 = vmatmul.mubr.f32.gmra.mrb[12].mxu1 %v6302_v52  ;;  %v5380_v52 = vpack.c.bf16 %v2921_v29, %v2920_v50  ;;  %v7020_v50 = vld [vmem:[#allocation42_spill] sm:$0xff]  ;;  %v7021_v29 = vld [vmem:[#allocation33_spill] sm:$0xff] }
  0xd6   : > { %4907 = vmatmul.mubr.f32.gmra.mrb[28].mxu0 %v6602_v42  ;;  %4565 = vmatprep.mubr.f32.mxu1 %v6311_v57  ;;  %v2922_v57 = vld [vmem:[#allocation7 + $0x3a0] sm:$0xff] }
  0xd7   : > { %4909 = vmatprep.mubr.f32.mxu0 %v2177_v44  ;;  %5243 = vmatpush3.bf16.msra.mxu1 %v5240_v19  ;;  %v2923_v19 = vld [vmem:[#allocation7 + $0x3a8] sm:$0xff]  ;;  %v7018_v44 = vld [vmem:[#allocation40_spill] sm:$0xff] }
  0xd8   : > { %5245 = vmatprep.subr.bf16.mxu1 %v5244_v63 }
  0xd9   : > { %4566 = vmatmul.mubr.f32.gmra.mrb[14].mxu1 %v6315_v60  ;;  %v5384_v60 = vpack.c.bf16 %v2923_v19, %v2922_v57  ;;  %v7023_v19 = vld [vmem:[#allocation35_spill] sm:$0xff] }
  0xda   : > { %4910 = vmatmul.mubr.f32.gmra.mrb[30].mxu0 %v2178_v48  ;;  %4568 = vmatprep.mubr.f32.mxu1 %v6320_v62  ;;  %v2924_v62 = vld [vmem:[#allocation7 + $0x3b0] sm:$0xff] }
  0xdb   : > { %4944 = vmatprep.mubr.f32.mxu0 %v6361_v36  ;;  %5247 = vmatpush3.bf16.msra.mxu1 %v5244_v63  ;;  %v2925_v36 = vld [vmem:[#allocation7 + $0x3b8] sm:$0xff]  ;;  %v1451_v48 = vld [vmem:[#allocation7 + $0x1d0] sm:$0xff] }
  0xdc   : > { %5249 = vmatprep.subr.bf16.mxu1 %v6607_v51 }
  0xdd   : > { %4569 = vmatmul.mubr.f32.gmra.mrb[16].mxu1 %v6327_v3  ;;  %v5388_v3 = vpack.c.bf16 %v2925_v36, %v2924_v62  ;;  %v1454_v62 = vld [vmem:[#allocation7 + $0x1e8] sm:$0xff] }
  0xde   : > { %4945 = vmatmul.mubr.f32.vlgmr.msra.gmra.mrb[0].mxu0 %v6370_v39  ;;  %4571 = vmatprep.mubr.f32.mxu1 %v6333_v10  ;;  %v2926_v10 = vld [vmem:[#allocation7 + $0x3c0] sm:$0xff]  ;;  %v2927_v39 = vld [vmem:[#allocation7 + $0x3c8] sm:$0xff] }
  0xdf   : > { %5379 = vmatpush3.bf16.msra.mxu0 %v6548_v4  ;;  %4947 = vmatprep.mubr.f32.mxu0 %v6378_v55  ;;  %v2929_v55 = vld [vmem:[#allocation7 + $0x3d8] sm:$0xff]  ;;  %v7015_v4 = vld [vmem:[#allocation29_spill] sm:$0xff]  ;;  %v7024_v36 = vld [vmem:[#allocation46_spill] sm:$0xff] }
  0xe0   : > { %5381 = vmatprep.subr.bf16.mxu0 %v5380_v52 }
  0xe1   : > { %4572 = vmatmul.mubr.f32.gmra.mrb[18].mxu1 %v6337_v14  ;;  %v5392_v14 = vpack.c.bf16 %v2927_v39, %v2926_v10  ;;  %v7026_v10 = vld [vmem:[#allocation48_spill] sm:$0xff]  ;;  %v6668_v39 = vld [vmem:[#allocation2 + $0x180] sm:$0xff] }
  0xe2   : > { %4948 = vmatmul.mubr.f32.gmra.mrb[2].mxu0 %v6396_v5  ;;  %4574 = vmatprep.mubr.f32.mxu1 %v6341_v16  ;;  %v2928_v16 = vld [vmem:[#allocation7 + $0x3d0] sm:$0xff]  ;;  %v2931_v5 = vld [vmem:[#allocation7 + $0x3e8] sm:$0xff] }
  0xe3   : > { %4950 = vmatprep.mubr.f32.mxu0 %v6399_v9  ;;  %5383 = vmatpush3.bf16.msra.mxu0 %v5380_v52  ;;  %v2933_v9 = vld [vmem:[#allocation7 + $0x3f8] sm:$0xff] }
  0xe4   : > { %5385 = vmatprep.subr.bf16.mxu0 %v5384_v60  ;;  %v7022_v52 = vld [vmem:[#allocation44_spill] sm:$0xff] }
  0xe5   : > { %4575 = vmatmul.mubr.f32.gmra.mrb[20].mxu1 %v6344_v17  ;;  %v5396_v17 = vpack.c.bf16 %v2929_v55, %v2928_v16  ;;  %v7027_v16 = vld [vmem:[#allocation39_spill] sm:$0xff] }
  0xe6   : > { %4951 = vmatmul.mubr.f32.gmra.mrb[4].mxu0 %v6412_v22  ;;  %4577 = vmatprep.mubr.f32.mxu1 %v6351_v28  ;;  %v2930_v28 = vld [vmem:[#allocation7 + $0x3e0] sm:$0xff]  ;;  %v3288_v22 = vld [vmem:[#allocation7 + $0x408] sm:$0xff]  ;;  %v1455_v55 = vld [vmem:[#allocation7 + $0x1f0] sm:$0xff] }
  0xe7   : > { %4953 = vmatprep.mubr.f32.mxu0 %v6415_v26  ;;  %5387 = vmatpush3.bf16.msra.mxu0 %v5384_v60  ;;  %v1453_v60 = vld [vmem:[#allocation7 + $0x1e0] sm:$0xff] }
  0xe8   : > { %5389 = vmatprep.subr.bf16.mxu0 %v5388_v3 }
  0xe9   : > { %4578 = vmatmul.mubr.f32.gmra.mrb[22].mxu1 %v6356_v32  ;;  %v5400_v32 = vpack.c.bf16 %v2931_v5, %v2930_v28  ;;  %v7028_v28 = vld [vmem:[#allocation41_spill] sm:$0xff]  ;;  %v6674_v5 = vld [vmem:[#allocation2 + $0x188] sm:$0xff] }
  0xea   : > { %4954 = vmatmul.mubr.f32.gmra.mrb[6].mxu0 %v6420_v47  ;;  %4580 = vmatprep.mubr.f32.mxu1 %v6359_v35  ;;  %v2932_v35 = vld [vmem:[#allocation7 + $0x3f0] sm:$0xff]  ;;  %v1444_v47 = vld [vmem:[#allocation7 + $0x198] sm:$0xff] }
  0xeb   : > { %4956 = vmatprep.mubr.f32.mxu0 %v6423_v58  ;;  %5391 = vmatpush3.bf16.msra.mxu0 %v5388_v3  ;;  %v7025_v3 = vld [vmem:[#allocation37_spill] sm:$0xff] }
  0xec   : > { %5393 = vmatprep.subr.bf16.mxu0 %v5392_v14 }
  0xed   : > { %4581 = vmatmul.mubr.f32.gmra.mrb[24].mxu1 %v6366_v0  ;;  %v5404_v0 = vpack.c.bf16 %v2933_v9, %v2932_v35  ;;  %v7029_v35 = vld [vmem:[#allocation43_spill] sm:$0xff]  ;;  %v7030_v9 = vld [vmem:[#allocation45_spill] sm:$0xff] }
  0xee   : > { %4957 = vmatmul.mubr.f32.gmra.mrb[8].mxu0 %v6428_v7  ;;  %4583 = vmatprep.mubr.f32.mxu1 %v6375_v53  ;;  %v3287_v53 = vld [vmem:[#allocation7 + $0x400] sm:$0xff]  ;;  %v1446_v7 = vld [vmem:[#allocation7 + $0x1a8] sm:$0xff] }
  0xef   : > { %4959 = vmatprep.mubr.f32.mxu0 %v6431_v20  ;;  %5395 = vmatpush3.bf16.msra.mxu0 %v5392_v14  ;;  %v6642_v26 = vpack.c.bf16 %v3288_v22, %v3287_v53  ;;  %v5272_v14 = vpack.c.bf16 %v1454_v62, %v1453_v60  ;;  %v2886_v53 = vld [vmem:[#allocation2 + $0x31] sm:$0xff]  ;;  %v3289_v22 = vld [vmem:[#allocation7 + $0x410] sm:$0xff]  ;;  %v6709_v60 = vld [vmem:[#allocation2 + $0x109] sm:$0xff] }
  0xf0   : > { %5397 = vmatprep.subr.bf16.mxu0 %v5396_v17  ;;  %v1412_v62 = vld [vmem:[#allocation2 + $0x38] sm:$0xff] }
  0xf1   : > { %4584 = vmatmul.mubr.f32.gmra.mrb[26].mxu1 %v6382_v56  ;;  %v1040_v56 = vld [vmem:[#allocation2 + $0x2] sm:$0xff] }
  0xf2   : > { %4960 = vmatmul.mubr.f32.gmra.mrb[10].mxu0 %v6434_v25  ;;  %4586 = vmatprep.mubr.f32.mxu1 %v6386_v59  ;;  %v1443_v59 = vld [vmem:[#allocation7 + $0x190] sm:$0xff] }
  0xf3   : > { %4962 = vmatprep.mubr.f32.mxu0 %v6445_v46  ;;  %5399 = vmatpush3.bf16.msra.mxu0 %v5396_v17  ;;  %v5252_v58 = vpack.c.bf16 %v1444_v47, %v1443_v59  ;;  %v7011_v25 = vld [vmem:[#allocation27_spill] sm:$0xff]  ;;  %v7032_v59 = vld [vmem:[#allocation49_spill] sm:$0xff] }
  0xf4   : > { %5401 = vmatprep.subr.bf16.mxu0 %v5400_v32  ;;  %v1448_v46 = vld [vmem:[#allocation7 + $0x1b8] sm:$0xff]  ;;  %v2887_v47 = vld [vmem:[#allocation2 + $0x39] sm:$0xff] }
  0xf5   : > { %4587 = vmatmul.mubr.f32.gmra.mrb[28].mxu1 %v6389_v61  ;;  %v1041_v61 = vld [vmem:[#allocation2 + $0xa] sm:$0xff] }
  0xf6   : > { %4963 = vmatmul.mubr.f32.gmra.mrb[12].mxu0 %v6456_v1  ;;  %4589 = vmatprep.mubr.f32.mxu1 %v6402_v12  ;;  %v1445_v12 = vld [vmem:[#allocation7 + $0x1a0] sm:$0xff]  ;;  %v7012_v1 = vld [vmem:[#allocation34_spill] sm:$0xff]  ;;  %v1456_v17 = vld [vmem:[#allocation7 + $0x1f8] sm:$0xff] }
  0xf7   : > { %4965 = vmatprep.mubr.f32.mxu0 %v6461_v23  ;;  %5403 = vmatpush3.bf16.msra.mxu0 %v5400_v32  ;;  %v5256_v20 = vpack.c.bf16 %v1446_v7, %v1445_v12  ;;  %v7013_v23 = vld [vmem:[#allocation28_spill] sm:$0xff]  ;;  %v5276_v32 = vpack.c.bf16 %v1456_v17, %v1455_v55  ;;  %v7033_v12 = vld [vmem:[#allocation17_spill] sm:$0xff]  ;;  %v7037_v55 = vld [vmem:[#allocation19_spill] sm:$0xff] }
  0xf8   : > { %5405 = vmatprep.subr.bf16.mxu0 %v5404_v0  ;;  %v3291_v7 = vld [vmem:[#allocation7 + $0x420] sm:$0xff] }
  0xf9   : > { %4590 = vmatmul.mubr.f32.gmra.mrb[30].mxu1 %v6405_v15  ;;  %v7010_v15 = vld [vmem:[#allocation32_spill] sm:$0xff] }
  0xfa   : > { %4966 = vmatmul.mubr.f32.gmra.mrb[14].mxu0 %v6469_v21  ;;  %4624 = vmatprep.mubr.f32.mxu1 %v1040_v56  ;;  %v7014_v21 = vld [vmem:[#allocation36_spill] sm:$0xff] }
  0xfb   : > { %4968 = vmatprep.mubr.f32.mxu0 %v6474_v45  ;;  %5407 = vmatpush3.bf16.msra.mxu0 %v5404_v0  ;;  %v1447_v45 = vld [vmem:[#allocation7 + $0x1b0] sm:$0xff]  ;;  %v3290_v56 = vld [vmem:[#allocation7 + $0x418] sm:$0xff] }
  0xfc   : > { %5409 = vmatprep.subr.bf16.mxu0 %v6642_v26  ;;  %v5784_v0 = vld [vmem:[#allocation2] sm:$0xff]  ;;  %v5786_v17 = vld [vmem:[#allocation2 + $0x129] sm:$0xff] }
  0xfd   : > { %4625 = vmatmul.mubr.f32.vlgmr.msra.gmra.mrb[0].mxu1 %v1041_v61  ;;  %v2888_v61 = vld [vmem:[#allocation2 + $0x49] sm:$0xff] }
  0xfe   : > { %4969 = vmatmul.mubr.f32.gmra.mrb[16].mxu0 %v6481_v24  ;;  %5251 = vmatpush3.bf16.msra.mxu1 %v6607_v51  ;;  %v5260_v24 = vpack.c.bf16 %v1448_v46, %v1447_v45  ;;  %v1452_v51 = vld [vmem:[#allocation7 + $0x1d8] sm:$0xff] }
  0xff   : > { %4627 = vmatprep.mubr.f32.mxu1 %v6449_v2  ;;  %4971 = vmatprep.mubr.f32.mxu0 %v7010_v15  ;;  %v1449_v2 = vld [vmem:[#allocation7 + $0x1c0] sm:$0xff]  ;;  %v5268_v57 = vpack.c.bf16 %v1452_v51, %v1451_v48  ;;  %v3292_v15 = vld [vmem:[#allocation7 + $0x428] sm:$0xff]  ;;  %v2890_v45 = vld [vmem:[#allocation2 + $0x61] sm:$0xff] }
 0x100   : > { %5253 = vmatprep.subr.bf16.mxu1 %v5252_v58  ;;  %v5264_v63 = vpack.c.bf16 %v1450_v37, %v1449_v2  ;;  %v5416_v46 = vpack.c.bf16 %v3292_v15, %v3291_v7  ;;  %v2894_v2 = vld [vmem:[#allocation2 + $0x91] sm:$0xff]  ;;  %v3302_v51 = vld [vmem:[#allocation7 + $0x478] sm:$0xff] }
 0x101   : > { %4628 = vmatmul.mubr.f32.gmra.mrb[2].mxu1 %v7011_v25  ;;  %v2889_v25 = vld [vmem:[#allocation2 + $0x51] sm:$0xff] }
 0x102   : > { %4972 = vmatmul.mubr.f32.gmra.mrb[18].mxu0 %v7012_v1  ;;  %4630 = vmatprep.mubr.f32.mxu1 %v7013_v23  ;;  %v3293_v1 = vld [vmem:[#allocation7 + $0x430] sm:$0xff]  ;;  %v3294_v23 = vld [vmem:[#allocation7 + $0x438] sm:$0xff]  ;;  %v5792_v7 = vld [vmem:[#allocation2 + $0x171] sm:$0xff] }
 0x103   : > { %4974 = vmatprep.mubr.f32.mxu0 %v7014_v21  ;;  %5255 = vmatpush3.bf16.msra.mxu1 %v5252_v58  ;;  %v5412_v58 = vpack.c.bf16 %v3290_v56, %v3289_v22  ;;  %v2892_v21 = vld [vmem:[#allocation2 + $0x79] sm:$0xff]  ;;  %v1419_v22 = vld [vmem:[#allocation2 + $0x90] sm:$0xff] }
 0x104   : > { %5257 = vmatprep.subr.bf16.mxu1 %v5256_v20  ;;  %v7039_v56 = vld [vmem:[#allocation21_spill] sm:$0xff] }
 0x105   : > { %4631 = vmatmul.mubr.f32.gmra.mrb[4].mxu1 %v7015_v4  ;;  %v3296_v4 = vld [vmem:[#allocation7 + $0x448] sm:$0xff]  ;;  %v1422_v15 = vld [vmem:[#allocation2 + $0xb0] sm:$0xff] }
 0x106   : > { %4975 = vmatmul.mubr.f32.gmra.mrb[20].mxu0 %v7016_v13  ;;  %4633 = vmatprep.mubr.f32.mxu1 %v7017_v11  ;;  %v3298_v13 = vld [vmem:[#allocation7 + $0x458] sm:$0xff] }
 0x107   : > { %4977 = vmatprep.mubr.f32.mxu0 %v7018_v44  ;;  %5259 = vmatpush3.bf16.msra.mxu1 %v5256_v20  ;;  %v7034_v20 = vld [vmem:[#allocation50_spill] sm:$0xff]  ;;  %v2896_v11 = vld [vmem:[#allocation2 + $0xa9] sm:$0xff] }
 0x108   : > { %5261 = vmatprep.subr.bf16.mxu1 %v5260_v24 }
 0x109   : > { %4634 = vmatmul.mubr.f32.gmra.mrb[6].mxu1 %v7019_v43  ;;  %v2898_v43 = vld [vmem:[#allocation2 + $0xc1] sm:$0xff] }
 0x10a   : > { %4978 = vmatmul.mubr.f32.gmra.mrb[22].mxu0 %v7020_v50  ;;  %4636 = vmatprep.mubr.f32.mxu1 %v7021_v29  ;;  %v7035_v50 = vld [vmem:[#allocation51_spill] sm:$0xff]  ;;  %v6695_v29 = vld [vmem:[#allocation2 + $0xd9] sm:$0xff] }
 0x10b   : > { %4980 = vmatprep.mubr.f32.mxu0 %v7022_v52  ;;  %5263 = vmatpush3.bf16.msra.mxu1 %v5260_v24  ;;  %v5420_v24 = vpack.c.bf16 %v3294_v23, %v3293_v1  ;;  %v1409_v52 = vld [vmem:[#allocation2 + $0x18] sm:$0xff]  ;;  %v1424_v23 = vld [vmem:[#allocation2 + $0xc8] sm:$0xff] }
 0x10c   : > { %5265 = vmatprep.subr.bf16.mxu1 %v5264_v63  ;;  %v7043_v1 = vld [vmem:[#allocation26_spill] sm:$0xff] }
 0x10d   : > { %4637 = vmatmul.mubr.f32.gmra.mrb[8].mxu1 %v7023_v19  ;;  %v1410_v19 = vld [vmem:[#allocation2 + $0x20] sm:$0xff] }
 0x10e   : > { %4981 = vmatmul.mubr.f32.gmra.mrb[24].mxu0 %v7024_v36  ;;  %4639 = vmatprep.mubr.f32.mxu1 %v7025_v3  ;;  %v1413_v36 = vld [vmem:[#allocation2 + $0x48] sm:$0xff]  ;;  %v7036_v3 = vld [vmem:[#allocation18_spill] sm:$0xff] }
 0x10f   : > { %4983 = vmatprep.mubr.f32.mxu0 %v7026_v10  ;;  %5267 = vmatpush3.bf16.msra.mxu1 %v5264_v63  ;;  %v3300_v63 = vld [vmem:[#allocation7 + $0x468] sm:$0xff]  ;;  %v1414_v10 = vld [vmem:[#allocation2 + $0x50] sm:$0xff] }
 0x110   : > { %5269 = vmatprep.subr.bf16.mxu1 %v5268_v57 }
 0x111   : > { %4640 = vmatmul.mubr.f32.gmra.mrb[10].mxu1 %v7027_v16  ;;  %v1415_v16 = vld [vmem:[#allocation2 + $0x60] sm:$0xff] }
 0x112   : > { %4984 = vmatmul.mubr.f32.gmra.mrb[26].mxu0 %v6541_v6  ;;  %4642 = vmatprep.mubr.f32.mxu1 %v7028_v28  ;;  %v7031_v6 = vld [vmem:[#allocation47_spill] sm:$0xff] }
 0x113   : > { %4986 = vmatprep.mubr.f32.mxu0 %v6668_v39  ;;  %5271 = vmatpush3.bf16.msra.mxu1 %v5268_v57  ;;  %v6702_v57 = vld [vmem:[#allocation2 + $0xf1] sm:$0xff]  ;;  %v1416_v28 = vld [vmem:[#allocation2 + $0x68] sm:$0xff] }
 0x114   : > { %5273 = vmatprep.subr.bf16.mxu1 %v5272_v14 }
 0x115   : > { %4643 = vmatmul.mubr.f32.gmra.mrb[12].mxu1 %v7029_v35  ;;  %v1417_v35 = vld [vmem:[#allocation2 + $0x78] sm:$0xff] }
 0x116   : > { %4987 = vmatmul.mubr.f32.gmra.mrb[28].mxu0 %v6674_v5  ;;  %4645 = vmatprep.mubr.f32.mxu1 %v7030_v9  ;;  %v7038_v9 = vld [vmem:[#allocation20_spill] sm:$0xff] }
 0x117   : > { %4989 = vmatprep.mubr.f32.mxu0 %v5784_v0  ;;  %5275 = vmatpush3.bf16.msra.mxu1 %v5272_v14  ;;  %v5785_v14 = vld [vmem:[#allocation2 + $0x121] sm:$0xff] }
 0x118   : > { %5277 = vmatprep.subr.bf16.mxu1 %v5276_v32 }
 0x119   : > { %4646 = vmatmul.mubr.f32.gmra.mrb[14].mxu1 %v7031_v6  ;;  %v5789_v6 = vld [vmem:[#allocation2 + $0x151] sm:$0xff] }
 0x11a   : > { %4990 = vmatmul.mubr.f32.gmra.mrb[30].mxu0 %v5784_v0  ;;  %4648 = vmatprep.mubr.f32.mxu1 %v7032_v59  ;;  %v5788_v0 = vld [vmem:[#allocation2 + $0x141] sm:$0xff]  ;;  %v5790_v59 = vld [vmem:[#allocation2 + $0x159] sm:$0xff] }
 0x11b   : > { %5024 = vmatprep.mubr.f32.mxu0 %v2886_v53  ;;  %5279 = vmatpush3.bf16.msra.mxu1 %v5276_v32  ;;  %v5787_v32 = vld [vmem:[#allocation2 + $0x139] sm:$0xff] }
 0x11c   : > { %5440 = vmatprep.subr.bf16.mxu1 %v7033_v12  ;;  %v1418_v53 = vld [vmem:[#allocation2 + $0x80] sm:$0xff] }
 0x11d   : > { %4649 = vmatmul.mubr.f32.gmra.mrb[16].mxu1 %v6544_v49  ;;  %v2891_v49 = vld [vmem:[#allocation2 + $0x69] sm:$0xff] }
 0x11e   : > { %5025 = vmatmul.mubr.f32.vlgmr.msra.gmra.mrb[0].mxu0 %v2887_v47  ;;  %4651 = vmatprep.mubr.f32.mxu1 %v7034_v20  ;;  %v1420_v47 = vld [vmem:[#allocation2 + $0x98] sm:$0xff] }
 0x11f   : > { %5411 = vmatpush3.bf16.msra.mxu0 %v6642_v26  ;;  %5027 = vmatprep.mubr.f32.mxu0 %v2888_v61  ;;  %v3295_v26 = vld [vmem:[#allocation7 + $0x440] sm:$0xff] }
 0x120   : > { %5413 = vmatprep.subr.bf16.mxu0 %v5412_v58  ;;  %v5424_v37 = vpack.c.bf16 %v3296_v4, %v3295_v26  ;;  %v5791_v61 = vld [vmem:[#allocation2 + $0x169] sm:$0xff]  ;;  %v7041_v20 = vld [vmem:[#allocation25_spill] sm:$0xff]  ;;  %v1426_v4 = vld [vmem:[#allocation2 + $0xe0] sm:$0xff] }
 0x121   : > { %4652 = vmatmul.mubr.f32.gmra.mrb[18].mxu1 %v6553_v34  ;;  %v2893_v34 = vld [vmem:[#allocation2 + $0x81] sm:$0xff]  ;;  %v7044_v26 = vld [vmem:[#allocation24_spill] sm:$0xff] }
 0x122   : > { %5028 = vmatmul.mubr.f32.gmra.mrb[2].mxu0 %v2889_v25  ;;  %4654 = vmatprep.mubr.f32.mxu1 %v6555_v18  ;;  %v3297_v18 = vld [vmem:[#allocation7 + $0x450] sm:$0xff] }
 0x123   : > { %5030 = vmatprep.mubr.f32.mxu0 %v2890_v45  ;;  %5415 = vmatpush3.bf16.msra.mxu0 %v5412_v58  ;;  %v5428_v44 = vpack.c.bf16 %v3298_v13, %v3297_v18  ;;  %v1421_v58 = vld [vmem:[#allocation2 + $0xa8] sm:$0xff]  ;;  %v1423_v25 = vld [vmem:[#allocation2 + $0xc0] sm:$0xff]  ;;  %v1428_v18 = vld [vmem:[#allocation2 + $0xf8] sm:$0xff] }
 0x124   : > { %5417 = vmatprep.subr.bf16.mxu0 %v5416_v46  ;;  %v2916_v45 = vld [vmem:[#allocation2 + $0x199] sm:$0xff] }
 0x125   : > { %4655 = vmatmul.mubr.f32.gmra.mrb[20].mxu1 %v6562_v38  ;;  %v2895_v38 = vld [vmem:[#allocation2 + $0x99] sm:$0xff] }
 0x126   : > { %5031 = vmatmul.mubr.f32.gmra.mrb[4].mxu0 %v2891_v49  ;;  %4657 = vmatprep.mubr.f32.mxu1 %v6564_v8  ;;  %v3299_v8 = vld [vmem:[#allocation7 + $0x460] sm:$0xff]  ;;  %v2917_v49 = vld [vmem:[#allocation2 + $0x1a1] sm:$0xff] }
 0x127   : > { %5033 = vmatprep.mubr.f32.mxu0 %v2892_v21  ;;  %5419 = vmatpush3.bf16.msra.mxu0 %v5416_v46  ;;  %v5432_v48 = vpack.c.bf16 %v3300_v63, %v3299_v8  ;;  %v7042_v46 = vld [vmem:[#allocation23_spill] sm:$0xff]  ;;  %v1425_v21 = vld [vmem:[#allocation2 + $0xd8] sm:$0xff] }
 0x128   : > { %5421 = vmatprep.subr.bf16.mxu0 %v5420_v24  ;;  %v3258_v13 = vld [vmem:[#allocation2 + $0x52] sm:$0xff]  ;;  %v3260_v8 = vld [vmem:[#allocation2 + $0x6a] sm:$0xff]  ;;  %v1431_v63 = vld [vmem:[#allocation2 + $0x120] sm:$0xff] }
 0x129   : > { %4658 = vmatmul.mubr.f32.gmra.mrb[22].mxu1 %v6570_v54  ;;  %v2897_v54 = vld [vmem:[#allocation2 + $0xb1] sm:$0xff] }
 0x12a   : > { %5034 = vmatmul.mubr.f32.gmra.mrb[6].mxu0 %v2893_v34  ;;  %4660 = vmatprep.mubr.f32.mxu1 %v6572_v27  ;;  %v3301_v27 = vld [vmem:[#allocation7 + $0x470] sm:$0xff] }
 0x12b   : > { %5036 = vmatprep.mubr.f32.mxu0 %v2894_v2  ;;  %5423 = vmatpush3.bf16.msra.mxu0 %v5420_v24  ;;  %v3255_v24 = vld [vmem:[#allocation2 + $0x32] sm:$0xff]  ;;  %v3256_v34 = vld [vmem:[#allocation2 + $0x3a] sm:$0xff] }
 0x12c   : > { %5425 = vmatprep.subr.bf16.mxu0 %v5424_v37  ;;  %v1427_v2 = vld [vmem:[#allocation2 + $0xf0] sm:$0xff] }
 0x12d   : > { %4661 = vmatmul.mubr.f32.gmra.mrb[24].mxu1 %v6578_v30  ;;  %v2899_v30 = vld [vmem:[#allocation2 + $0xc9] sm:$0xff] }
 0x12e   : > { %5037 = vmatmul.mubr.f32.gmra.mrb[8].mxu0 %v2895_v38  ;;  %4663 = vmatprep.mubr.f32.mxu1 %v6580_v31  ;;  %v5436_v31 = vpack.c.bf16 %v3302_v51, %v3301_v27  ;;  %v1429_v38 = vld [vmem:[#allocation2 + $0x108] sm:$0xff]  ;;  %v1433_v27 = vld [vmem:[#allocation2 + $0x138] sm:$0xff] }
 0x12f   : > { %5039 = vmatprep.mubr.f32.mxu0 %v2896_v11  ;;  %5427 = vmatpush3.bf16.msra.mxu0 %v5424_v37  ;;  %v3257_v37 = vld [vmem:[#allocation2 + $0x4a] sm:$0xff]  ;;  %v3259_v11 = vld [vmem:[#allocation2 + $0x62] sm:$0xff]  ;;  %v3263_v51 = vld [vmem:[#allocation2 + $0x92] sm:$0xff] }
 0x130   : > { %5429 = vmatprep.subr.bf16.mxu0 %v5428_v44 }
 0x131   : > { %4664 = vmatmul.mubr.f32.gmra.mrb[26].mxu1 %v6586_v33  ;;  %v6700_v33 = vld [vmem:[#allocation2 + $0xe1] sm:$0xff] }
 0x132   : > { %5040 = vmatmul.mubr.f32.gmra.mrb[10].mxu0 %v2897_v54  ;;  %4666 = vmatprep.mubr.f32.mxu1 %v7035_v50  ;;  %v3261_v54 = vld [vmem:[#allocation2 + $0x7a] sm:$0xff] }
 0x133   : > { %5042 = vmatprep.mubr.f32.mxu0 %v2898_v43  ;;  %5431 = vmatpush3.bf16.msra.mxu0 %v5428_v44  ;;  %v1430_v44 = vld [vmem:[#allocation2 + $0x110] sm:$0xff]  ;;  %v1432_v43 = vld [vmem:[#allocation2 + $0x128] sm:$0xff]  ;;  %v1434_v50 = vld [vmem:[#allocation2 + $0x140] sm:$0xff] }
 0x134   : > { %5433 = vmatprep.subr.bf16.mxu0 %v5432_v48 }
 0x135   : > { %4667 = vmatmul.mubr.f32.gmra.mrb[28].mxu1 %v6594_v40  ;;  %v6707_v40 = vld [vmem:[#allocation2 + $0xf9] sm:$0xff] }
 0x136   : > { %5043 = vmatmul.mubr.f32.gmra.mrb[12].mxu0 %v2899_v30  ;;  %4669 = vmatprep.mubr.f32.mxu1 %v6596_v41  ;;  %v1411_v41 = vld [vmem:[#allocation2 + $0x30] sm:$0xff]  ;;  %v3264_v30 = vld [vmem:[#allocation2 + $0x9a] sm:$0xff] }
 0x137   : > { %5045 = vmatprep.mubr.f32.mxu0 %v6695_v29  ;;  %5435 = vmatpush3.bf16.msra.mxu0 %v5432_v48  ;;  %v3262_v48 = vld [vmem:[#allocation2 + $0x82] sm:$0xff] }
 0x138   : > { %5437 = vmatprep.subr.bf16.mxu0 %v5436_v31 }
 0x139   : > { %4670 = vmatmul.mubr.f32.gmra.mrb[30].mxu1 %v6602_v42  ;;  %v6714_v42 = vld [vmem:[#allocation2 + $0x111] sm:$0xff] }
 0x13a   : > { %5046 = vmatmul.mubr.f32.gmra.mrb[14].mxu0 %v6700_v33  ;;  %4704 = vmatprep.mubr.f32.mxu1 %v1409_v52  ;;  %v3265_v52 = vld [vmem:[#allocation2 + $0xaa] sm:$0xff] }
 0x13b   : > { %5048 = vmatprep.mubr.f32.mxu0 %v6702_v57  ;;  %5439 = vmatpush3.bf16.msra.mxu0 %v5436_v31  ;;  %v1435_v31 = vld [vmem:[#allocation2 + $0x150] sm:$0xff] }
 0x13d   : > { %4705 = vmatmul.mubr.f32.vlgmr.msra.gmra.mrb[0].mxu1 %v1410_v19  ;;  %v1436_v19 = vld [vmem:[#allocation2 + $0x158] sm:$0xff] }
 0x13e   : > { %5049 = vmatmul.mubr.f32.gmra.mrb[16].mxu0 %v6707_v40  ;;  %5448 = vmatpush3.bf16.msra.mxu1 %v7033_v12  ;;  %v7040_v12 = vld [vmem:[#allocation22_spill] sm:$0xff] }
 0x13f   : > { %4707 = vmatprep.mubr.f32.mxu1 %v1411_v41  ;;  %5051 = vmatprep.mubr.f32.mxu0 %v6709_v60  ;;  %v3266_v41 = vld [vmem:[#allocation2 + $0xb2] sm:$0xff] }
 0x140   : > { %5441 = vmatprep.subr.bf16.mxu1 %v7036_v3 }
 0x141   : > { %4708 = vmatmul.mubr.f32.gmra.mrb[2].mxu1 %v1412_v62  ;;  %v1437_v62 = vld [vmem:[#allocation2 + $0x168] sm:$0xff] }
 0x142   : > { %5052 = vmatmul.mubr.f32.gmra.mrb[18].mxu0 %v6714_v42  ;;  %4710 = vmatprep.mubr.f32.mxu1 %v1413_v36  ;;  %v3267_v36 = vld [vmem:[#allocation2 + $0xc2] sm:$0xff] }
 0x143   : > { %5054 = vmatprep.mubr.f32.mxu0 %v5785_v14  ;;  %5449 = vmatpush3.bf16.msra.mxu1 %v7036_v3  ;;  %v1438_v3 = vld [vmem:[#allocation2 + $0x170] sm:$0xff]  ;;  %v3269_v14 = vld [vmem:[#allocation2 + $0xda] sm:$0xff] }
 0x144   : > { %5442 = vmatprep.subr.bf16.mxu1 %v7037_v55 }
 0x145   : > { %4711 = vmatmul.mubr.f32.gmra.mrb[4].mxu1 %v1414_v10  ;;  %v3268_v10 = vld [vmem:[#allocation2 + $0xca] sm:$0xff] }
 0x146   : > { %5055 = vmatmul.mubr.f32.gmra.mrb[20].mxu0 %v5786_v17  ;;  %4713 = vmatprep.mubr.f32.mxu1 %v1415_v16  ;;  %v3270_v16 = vld [vmem:[#allocation2 + $0xe2] sm:$0xff]  ;;  %v3272_v17 = vld [vmem:[#allocation2 + $0xfa] sm:$0xff] }
 0x147   : > { %5057 = vmatprep.mubr.f32.mxu0 %v5787_v32  ;;  %5450 = vmatpush3.bf16.msra.mxu1 %v7037_v55  ;;  %v3271_v55 = vld [vmem:[#allocation2 + $0xf2] sm:$0xff] }
 0x148   : > { %5443 = vmatprep.subr.bf16.mxu1 %v7038_v9  ;;  %v3274_v32 = vld [vmem:[#allocation2 + $0x112] sm:$0xff] }
 0x149   : > { %4714 = vmatmul.mubr.f32.gmra.mrb[6].mxu1 %v1416_v28  ;;  %v3273_v28 = vld [vmem:[#allocation2 + $0x10a] sm:$0xff] }
 0x14a   : > { %5058 = vmatmul.mubr.f32.gmra.mrb[22].mxu0 %v5788_v0  ;;  %4716 = vmatprep.mubr.f32.mxu1 %v1417_v35  ;;  %v3275_v35 = vld [vmem:[#allocation2 + $0x122] sm:$0xff]  ;;  %v3279_v0 = vld [vmem:[#allocation2 + $0x152] sm:$0xff] }
 0x14b   : > { %5060 = vmatprep.mubr.f32.mxu0 %v5789_v6  ;;  %5451 = vmatpush3.bf16.msra.mxu1 %v7038_v9  ;;  %v3278_v9 = vld [vmem:[#allocation2 + $0x142] sm:$0xff]  ;;  %v3281_v6 = vld [vmem:[#allocation2 + $0x16a] sm:$0xff] }
 0x14c   : > { %5444 = vmatprep.subr.bf16.mxu1 %v7039_v56 }
 0x14d   : > { %4717 = vmatmul.mubr.f32.gmra.mrb[8].mxu1 %v1418_v53  ;;  %v3280_v53 = vld [vmem:[#allocation2 + $0x15a] sm:$0xff] }
 0x14e   : > { %5061 = vmatmul.mubr.f32.gmra.mrb[24].mxu0 %v5790_v59  ;;  %4719 = vmatprep.mubr.f32.mxu1 %v1419_v22  ;;  %v1805_v22 = vld [vmem:[#allocation2 + $0x159] sm:$0xff]  ;;  %v3283_v59 = vld [vmem:[#allocation2 + $0x182] sm:$0xff] }
 0x14f   : > { %5063 = vmatprep.mubr.f32.mxu0 %v5791_v61  ;;  %5452 = vmatpush3.bf16.msra.mxu1 %v7039_v56  ;;  %v1806_v56 = vld [vmem:[#allocation2 + $0x169] sm:$0xff] }
 0x150   : > { %5445 = vmatprep.subr.bf16.mxu1 %v7040_v12  ;;  %v3284_v61 = vld [vmem:[#allocation2 + $0x18a] sm:$0xff] }
 0x151   : > { %4720 = vmatmul.mubr.f32.gmra.mrb[10].mxu1 %v1420_v47  ;;  %v1807_v47 = vld [vmem:[#allocation2 + $0x171] sm:$0xff] }
 0x152   : > { %5064 = vmatmul.mubr.f32.gmra.mrb[26].mxu0 %v5792_v7  ;;  %4722 = vmatprep.mubr.f32.mxu1 %v1421_v58  ;;  %v1808_v58 = vld [vmem:[#allocation2 + $0x181] sm:$0xff]  ;;  %v1809_v7 = vld [vmem:[#allocation2 + $0x189] sm:$0xff] }
 0x153   : > { %5066 = vmatprep.mubr.f32.mxu0 %v7041_v20  ;;  %5453 = vmatpush3.bf16.msra.mxu1 %v7040_v12  ;;  %v3285_v12 = vld [vmem:[#allocation2 + $0x19a] sm:$0xff] }
 0x154   : > { %5446 = vmatprep.subr.bf16.mxu1 %v7042_v46 }
 0x155   : > { %4723 = vmatmul.mubr.f32.gmra.mrb[12].mxu1 %v1422_v15  ;;  %v3286_v15 = vld [vmem:[#allocation2 + $0x1a2] sm:$0xff] }
 0x156   : > { %5067 = vmatmul.mubr.f32.gmra.mrb[28].mxu0 %v7043_v1  ;;  %4725 = vmatprep.mubr.f32.mxu1 %v1423_v25 }
 0x157   : > { %5069 = vmatprep.mubr.f32.mxu0 %v2916_v45  ;;  %5454 = vmatpush3.bf16.msra.mxu1 %v7042_v46 }
 0x158   : > { %5447 = vmatprep.subr.bf16.mxu1 %v7044_v26 }
 0x159   : > { %4726 = vmatmul.mubr.f32.gmra.mrb[14].mxu1 %v1424_v23 }
 0x15a   : > { %5070 = vmatmul.mubr.f32.gmra.mrb[30].mxu0 %v2917_v49  ;;  %4728 = vmatprep.mubr.f32.mxu1 %v1425_v21 }
 0x15b   : > { %5104 = vmatprep.mubr.f32.mxu0 %v3255_v24  ;;  %5455 = vmatpush3.bf16.msra.mxu1 %v7044_v26 }
 0x15d   : > { %4729 = vmatmul.mubr.f32.gmra.mrb[16].mxu1 %v1426_v4 }
 0x15e   : > { %5105 = vmatmul.mubr.f32.vlgmr.msra.gmra.mrb[0].mxu0 %v3256_v34  ;;  %4731 = vmatprep.mubr.f32.mxu1 %v1427_v2 }
 0x15f   : > { %5107 = vmatprep.mubr.f32.mxu0 %v3257_v37 }
 0x161   : > { %4732 = vmatmul.mubr.f32.gmra.mrb[18].mxu1 %v1428_v18 }
 0x162   : > { %5108 = vmatmul.mubr.f32.gmra.mrb[2].mxu0 %v3258_v13  ;;  %4734 = vmatprep.mubr.f32.mxu1 %v1429_v38 }
 0x163   : > { %5110 = vmatprep.mubr.f32.mxu0 %v3259_v11 }
 0x165   : > { %4735 = vmatmul.mubr.f32.gmra.mrb[20].mxu1 %v1430_v44 }
 0x166   : > { %5111 = vmatmul.mubr.f32.gmra.mrb[4].mxu0 %v3260_v8  ;;  %4737 = vmatprep.mubr.f32.mxu1 %v1431_v63 }
 0x167   : > { %5113 = vmatprep.mubr.f32.mxu0 %v3261_v54 }
 0x169   : > { %4738 = vmatmul.mubr.f32.gmra.mrb[22].mxu1 %v1432_v43 }
 0x16a   : > { %5114 = vmatmul.mubr.f32.gmra.mrb[6].mxu0 %v3262_v48  ;;  %4740 = vmatprep.mubr.f32.mxu1 %v1433_v27 }
 0x16b   : > { %5116 = vmatprep.mubr.f32.mxu0 %v3263_v51 }
 0x16d   : > { %4741 = vmatmul.mubr.f32.gmra.mrb[24].mxu1 %v1434_v50 }
 0x16e   : > { %5117 = vmatmul.mubr.f32.gmra.mrb[8].mxu0 %v3264_v30  ;;  %4743 = vmatprep.mubr.f32.mxu1 %v1435_v31 }
 0x16f   : > { %5119 = vmatprep.mubr.f32.mxu0 %v3265_v52 }
 0x171   : > { %4744 = vmatmul.mubr.f32.gmra.mrb[26].mxu1 %v1436_v19 }
 0x172   : > { %5120 = vmatmul.mubr.f32.gmra.mrb[10].mxu0 %v3266_v41  ;;  %4746 = vmatprep.mubr.f32.mxu1 %v1437_v62 }
 0x173   : > { %5122 = vmatprep.mubr.f32.mxu0 %v3267_v36 }
 0x175   : > { %4747 = vmatmul.mubr.f32.gmra.mrb[28].mxu1 %v1438_v3 }
 0x176   : > { %5123 = vmatmul.mubr.f32.gmra.mrb[12].mxu0 %v3268_v10  ;;  %4749 = vmatprep.mubr.f32.mxu1 %v6668_v39  ;;  %v3276_v39 = vld [vmem:[#allocation2 + $0x12a] sm:$0xff] }
 0x177   : > { %5125 = vmatprep.mubr.f32.mxu0 %v3269_v14 }
 0x179   : > { %4750 = vmatmul.mubr.f32.gmra.mrb[30].mxu1 %v6674_v5  ;;  %v1800_v5 = vld [vmem:[#allocation2 + $0x121] sm:$0xff] }
 0x17a   : > { %5126 = vmatmul.mubr.f32.gmra.mrb[14].mxu0 %v3270_v16  ;;  %4808 = vmatprep.mubr.f32.mxu1 %v6695_v29  ;;  %v3277_v29 = vld [vmem:[#allocation2 + $0x13a] sm:$0xff] }
 0x17b   : > { %5128 = vmatprep.mubr.f32.mxu0 %v3271_v55 }
 0x17d   : > { %4809 = vmatmul.mubr.f32.vlgmr.msra.gmra.mrb[16].mxu1 %v6700_v33  ;;  %v1801_v33 = vld [vmem:[#allocation2 + $0x129] sm:$0xff] }
 0x17e   : > { %5129 = vmatmul.mubr.f32.gmra.mrb[16].mxu0 %v3272_v17  ;;  %4811 = vmatprep.mubr.f32.mxu1 %v6702_v57  ;;  %v1802_v57 = vld [vmem:[#allocation2 + $0x139] sm:$0xff] }
 0x17f   : > { %5131 = vmatprep.mubr.f32.mxu0 %v3273_v28 }
 0x181   : > { %4812 = vmatmul.mubr.f32.gmra.mrb[18].mxu1 %v6707_v40  ;;  %v1803_v40 = vld [vmem:[#allocation2 + $0x141] sm:$0xff] }
 0x182   : > { %5132 = vmatmul.mubr.f32.gmra.mrb[18].mxu0 %v3274_v32  ;;  %4814 = vmatprep.mubr.f32.mxu1 %v6709_v60  ;;  %v1804_v60 = vld [vmem:[#allocation2 + $0x151] sm:$0xff] }
 0x183   : > { %5134 = vmatprep.mubr.f32.mxu0 %v3275_v35 }
 0x185   : > { %4815 = vmatmul.mubr.f32.gmra.mrb[20].mxu1 %v6714_v42  ;;  %v3282_v42 = vld [vmem:[#allocation2 + $0x172] sm:$0xff] }
 0x186   : > { %5135 = vmatmul.mubr.f32.gmra.mrb[20].mxu0 %v3276_v39  ;;  %4817 = vmatprep.mubr.f32.mxu1 %v1800_v5 }
 0x187   : > { %5137 = vmatprep.mubr.f32.mxu0 %v3277_v29 }
 0x189   : > { %4818 = vmatmul.mubr.f32.gmra.mrb[22].mxu1 %v1801_v33 }
 0x18a   : > { %5138 = vmatmul.mubr.f32.gmra.mrb[22].mxu0 %v3278_v9  ;;  %4820 = vmatprep.mubr.f32.mxu1 %v1802_v57 }
 0x18b   : > { %5140 = vmatprep.mubr.f32.mxu0 %v3279_v0 }
 0x18d   : > { %4821 = vmatmul.mubr.f32.gmra.mrb[24].mxu1 %v1803_v40 }
 0x18e   : > { %5141 = vmatmul.mubr.f32.gmra.mrb[24].mxu0 %v3280_v53  ;;  %4823 = vmatprep.mubr.f32.mxu1 %v1804_v60 }
 0x18f   : > { %5143 = vmatprep.mubr.f32.mxu0 %v3281_v6 }
 0x191   : > { %4824 = vmatmul.mubr.f32.gmra.mrb[26].mxu1 %v1805_v22 }
 0x192   : > { %5144 = vmatmul.mubr.f32.gmra.mrb[26].mxu0 %v3282_v42  ;;  %4826 = vmatprep.mubr.f32.mxu1 %v1806_v56 }
 0x193   : > { %5146 = vmatprep.mubr.f32.mxu0 %v3283_v59 }
 0x195   : > { %4827 = vmatmul.mubr.f32.gmra.mrb[28].mxu1 %v1807_v47 }
 0x196   : > { %5147 = vmatmul.mubr.f32.gmra.mrb[28].mxu0 %v3284_v61  ;;  %4829 = vmatprep.mubr.f32.mxu1 %v1808_v58 }
 0x197   : > { %5149 = vmatprep.mubr.f32.mxu0 %v3285_v12 }
 0x199   : > { %4830 = vmatmul.mubr.f32.gmra.mrb[30].mxu1 %v1809_v7 }
 0x19a   : > { %5150 = vmatmul.mubr.f32.gmra.mrb[30].mxu0 %v3286_v15 }
 0x210   : > { %v4706_v20 = vpop.f32.mrb[0].mxu1 }
 0x211   : > { %v1523_v25 = vpop.f32.mrb[1].mxu1 }
 0x214   : > { %v4709_v45 = vpop.f32.mrb[2].mxu1 }
 0x215   : > { %v1533_v46 = vpop.f32.mrb[3].mxu1 }
 0x218   : > { %v4712_v1 = vpop.f32.mrb[4].mxu1 }
 0x219   : > { %v1543_v23 = vpop.f32.mrb[5].mxu1 }
 0x21c   : > { %v4715_v49 = vpop.f32.mrb[6].mxu1 }
 0x21d   : > { %v1553_v21 = vpop.f32.mrb[7].mxu1 }
 0x220   : > { %v4718_v24 = vpop.f32.mrb[8].mxu1 }
 0x221   : > { %v1563_v26 = vpop.f32.mrb[9].mxu1 }
 0x224   : > { %v4721_v4 = vpop.f32.mrb[10].mxu1 }
 0x225   : > { %v6741_v34 = vpop.f32.mrb[11].mxu1 }
 0x228   : > { %v6743_v2 = vpop.f32.mrb[12].mxu1 }
 0x229   : > { %v6745_v37 = vpop.f32.mrb[13].mxu1 }
 0x22c   : > { %v6747_v18 = vpop.f32.mrb[14].mxu1 }
 0x22d   : > { %v6749_v13 = vpop.f32.mrb[15].mxu1 }
 0x231   : > { %v5106_v38 = vpop.f32.mrb[0].mxu0 }
 0x232   : > { %v5456_v11 = vadd.f32 %v5106_v38, %v4706_v20  ;;  %v3369_v44 = vpop.f32.mrb[1].mxu0 }
 0x233   : > { %v5457_v8 = vadd.f32 %v3369_v44, %v1523_v25 }
 0x234   : > { %3657 = vst [vmem:[%s6753_s21 + $0x8] sm:$0xff] %v5456_v11  ;;  %v3727_v63 = vmul.f32 %v5456_v11, %v5456_v11 }
 0x235   : > { %3656 = vst [vmem:[%s6753_s21] sm:$0xff] %v5457_v8  ;;  %v3688_v54 = vadd.f32 %v5457_v8, %v5456_v11  ;;  %v3726_v43 = vmul.f32 %v5457_v8, %v5457_v8  ;;  %v5109_v48 = vpop.f32.mrb[2].mxu0 }
 0x236   : > { %v5458_v27 = vadd.f32 %v5109_v48, %v4709_v45  ;;  %v3379_v51 = vpop.f32.mrb[3].mxu0 }
 0x237   : > { %v3758_v50 = vadd.f32 %v3727_v63, %v3726_v43  ;;  %v5459_v30 = vadd.f32 %v3379_v51, %v1533_v46 }
 0x238   : > { %3659 = vst [vmem:[%s6753_s21 + $0x18] sm:$0xff] %v5458_v27  ;;  %v3729_v36 = vmul.f32 %v5458_v27, %v5458_v27 }
 0x239   : > { %3658 = vst [vmem:[%s6753_s21 + $0x10] sm:$0xff] %v5459_v30  ;;  %v3689_v31 = vadd.f32 %v5459_v30, %v3688_v54  ;;  %v3728_v52 = vmul.f32 %v5459_v30, %v5459_v30  ;;  %v5112_v19 = vpop.f32.mrb[4].mxu0 }
 0x23a   : > { %v5460_v41 = vadd.f32 %v5112_v19, %v4712_v1  ;;  %v3389_v62 = vpop.f32.mrb[5].mxu0 }
 0x23b   : > { %v3759_v3 = vadd.f32 %v3758_v50, %v3728_v52  ;;  %v5461_v10 = vadd.f32 %v3389_v62, %v1543_v23  ;;  %v3690_v14 = vadd.f32 %v5458_v27, %v3689_v31 }
 0x23c   : > { %3661 = vst [vmem:[%s6753_s21 + $0x28] sm:$0xff] %v5460_v41  ;;  %v3731_v39 = vmul.f32 %v5460_v41, %v5460_v41 }
 0x23d   : > { %3660 = vst [vmem:[%s6753_s21 + $0x20] sm:$0xff] %v5461_v10  ;;  %v3691_v16 = vadd.f32 %v5461_v10, %v3690_v14  ;;  %v3730_v55 = vmul.f32 %v5461_v10, %v5461_v10  ;;  %v3760_v17 = vadd.f32 %v3759_v3, %v3729_v36  ;;  %v5115_v28 = vpop.f32.mrb[6].mxu0 }
 0x23e   : > { %v5462_v32 = vadd.f32 %v5115_v28, %v4715_v49  ;;  %v3399_v35 = vpop.f32.mrb[7].mxu0 }
 0x23f   : > { %v3761_v5 = vadd.f32 %v3760_v17, %v3730_v55  ;;  %v5463_v29 = vadd.f32 %v3399_v35, %v1553_v21  ;;  %v3692_v33 = vadd.f32 %v5460_v41, %v3691_v16 }
 0x240   : > { %3663 = vst [vmem:[%s6753_s21 + $0x38] sm:$0xff] %v5462_v32  ;;  %v3733_v6 = vmul.f32 %v5462_v32, %v5462_v32 }
 0x241   : > { %3662 = vst [vmem:[%s6753_s21 + $0x30] sm:$0xff] %v5463_v29  ;;  %v3693_v9 = vadd.f32 %v5463_v29, %v3692_v33  ;;  %v3732_v57 = vmul.f32 %v5463_v29, %v5463_v29  ;;  %v3762_v0 = vadd.f32 %v3761_v5, %v3731_v39  ;;  %v5118_v40 = vpop.f32.mrb[8].mxu0 }
 0x242   : > { %v5464_v53 = vadd.f32 %v5118_v40, %v4718_v24  ;;  %v3409_v60 = vpop.f32.mrb[9].mxu0 }
 0x243   : > { %v3763_v22 = vadd.f32 %v3762_v0, %v3732_v57  ;;  %v5465_v42 = vadd.f32 %v3409_v60, %v1563_v26  ;;  %v3694_v56 = vadd.f32 %v5462_v32, %v3693_v9 }
 0x244   : > { %3665 = vst [vmem:[%s6753_s21 + $0x48] sm:$0xff] %v5464_v53  ;;  %v3735_v15 = vmul.f32 %v5464_v53, %v5464_v53 }
 0x245   : > { %3664 = vst [vmem:[%s6753_s21 + $0x40] sm:$0xff] %v5465_v42  ;;  %v3695_v59 = vadd.f32 %v5465_v42, %v3694_v56  ;;  %v3734_v47 = vmul.f32 %v5465_v42, %v5465_v42  ;;  %v3764_v61 = vadd.f32 %v3763_v22, %v3733_v6  ;;  %v5121_v58 = vpop.f32.mrb[10].mxu0 }
 0x246   : > { %v5466_v12 = vadd.f32 %v5121_v58, %v4721_v4  ;;  %v3419_v7 = vpop.f32.mrb[11].mxu0 }
 0x247   : > { %v3765_v20 = vadd.f32 %v3764_v61, %v3734_v47  ;;  %v5467_v25 = vadd.f32 %v3419_v7, %v6741_v34  ;;  %v3696_v45 = vadd.f32 %v5464_v53, %v3695_v59 }
 0x248   : > { %3667 = vst [vmem:[%s6753_s21 + $0x58] sm:$0xff] %v5466_v12  ;;  %v3737_v26 = vmul.f32 %v5466_v12, %v5466_v12 }
 0x249   : > { %3666 = vst [vmem:[%s6753_s21 + $0x50] sm:$0xff] %v5467_v25  ;;  %v3697_v46 = vadd.f32 %v5467_v25, %v3696_v45  ;;  %v3736_v1 = vmul.f32 %v5467_v25, %v5467_v25  ;;  %v3766_v23 = vadd.f32 %v3765_v20, %v3735_v15  ;;  %v5124_v49 = vpop.f32.mrb[12].mxu0 }
 0x24a   : > { %v5468_v21 = vadd.f32 %v5124_v49, %v6743_v2  ;;  %v3429_v24 = vpop.f32.mrb[13].mxu0 }
 0x24b   : > { %v3767_v4 = vadd.f32 %v3766_v23, %v3736_v1  ;;  %v5469_v38 = vadd.f32 %v3429_v24, %v6745_v37  ;;  %v3698_v11 = vadd.f32 %v5466_v12, %v3697_v46 }
 0x24c   : > { %3669 = vst [vmem:[%s6753_s21 + $0x68] sm:$0xff] %v5468_v21  ;;  %v3739_v48 = vmul.f32 %v5468_v21, %v5468_v21 }
 0x24d   : > { %3668 = vst [vmem:[%s6753_s21 + $0x60] sm:$0xff] %v5469_v38  ;;  %v3699_v34 = vadd.f32 %v5469_v38, %v3698_v11  ;;  %v3738_v44 = vmul.f32 %v5469_v38, %v5469_v38  ;;  %v3768_v8 = vadd.f32 %v3767_v4, %v3737_v26  ;;  %v5127_v63 = vpop.f32.mrb[14].mxu0 }
 0x24e   : > { %v5470_v54 = vadd.f32 %v5127_v63, %v6747_v18  ;;  %v3439_v43 = vpop.f32.mrb[15].mxu0 }
 0x24f   : > { %v3769_v27 = vadd.f32 %v3768_v8, %v3738_v44  ;;  %v5471_v2 = vadd.f32 %v3439_v43, %v6749_v13  ;;  %v3700_v51 = vadd.f32 %v5468_v21, %v3699_v34 }
 0x250   : > { %3671 = vst [vmem:[%s6753_s21 + $0x78] sm:$0xff] %v5470_v54  ;;  %v4810_v37 = vpop.f32.mrb[16].mxu1  ;;  %v3741_v36 = vmul.f32 %v5470_v54, %v5470_v54 }
 0x251   : > { %3670 = vst [vmem:[%s6753_s21 + $0x70] sm:$0xff] %v5471_v2  ;;  %v3701_v50 = vadd.f32 %v5471_v2, %v3700_v51  ;;  %v3740_v30 = vmul.f32 %v5471_v2, %v5471_v2  ;;  %v3770_v31 = vadd.f32 %v3769_v27, %v3739_v48  ;;  %v5130_v52 = vpop.f32.mrb[16].mxu0  ;;  %v1972_v19 = vpop.f32.mrb[17].mxu1 }
 0x252   : > { %v5472_v41 = vadd.f32 %v5130_v52, %v4810_v37  ;;  %v3449_v62 = vpop.f32.mrb[17].mxu0 }
 0x253   : > { %v3771_v18 = vadd.f32 %v3770_v31, %v3740_v30  ;;  %v5473_v3 = vadd.f32 %v3449_v62, %v1972_v19  ;;  %v3702_v10 = vadd.f32 %v5470_v54, %v3701_v50 }
 0x254   : > { %3673 = vst [vmem:[%s6753_s21 + $0x88] sm:$0xff] %v5472_v41  ;;  %v4813_v13 = vpop.f32.mrb[18].mxu1  ;;  %v3743_v39 = vmul.f32 %v5472_v41, %v5472_v41 }
 0x255   : > { %3672 = vst [vmem:[%s6753_s21 + $0x80] sm:$0xff] %v5473_v3  ;;  %v3703_v14 = vadd.f32 %v5473_v3, %v3702_v10  ;;  %v3742_v16 = vmul.f32 %v5473_v3, %v5473_v3  ;;  %v3772_v55 = vadd.f32 %v3771_v18, %v3741_v36  ;;  %v5133_v17 = vpop.f32.mrb[18].mxu0  ;;  %v1982_v28 = vpop.f32.mrb[19].mxu1 }
 0x256   : > { %v5474_v32 = vadd.f32 %v5133_v17, %v4813_v13  ;;  %v3459_v35 = vpop.f32.mrb[19].mxu0 }
 0x257   : > { %v3773_v5 = vadd.f32 %v3772_v55, %v3742_v16  ;;  %v5475_v29 = vadd.f32 %v3459_v35, %v1982_v28  ;;  %v3704_v33 = vadd.f32 %v5472_v41, %v3703_v14 }
 0x258   : > { %3675 = vst [vmem:[%s6753_s21 + $0x98] sm:$0xff] %v5474_v32  ;;  %v4816_v9 = vpop.f32.mrb[20].mxu1  ;;  %v3745_v42 = vmul.f32 %v5474_v32, %v5474_v32 }
 0x259   : > { %3674 = vst [vmem:[%s6753_s21 + $0x90] sm:$0xff] %v5475_v29  ;;  %v3705_v57 = vadd.f32 %v5475_v29, %v3704_v33  ;;  %v3744_v0 = vmul.f32 %v5475_v29, %v5475_v29  ;;  %v3774_v40 = vadd.f32 %v3773_v5, %v3743_v39  ;;  %v5136_v53 = vpop.f32.mrb[20].mxu0  ;;  %v1992_v60 = vpop.f32.mrb[21].mxu1 }
 0x25a   : > { %v5476_v6 = vadd.f32 %v5136_v53, %v4816_v9  ;;  %v3469_v22 = vpop.f32.mrb[21].mxu0 }
 0x25b   : > { %v3775_v56 = vadd.f32 %v3774_v40, %v3744_v0  ;;  %v5477_v59 = vadd.f32 %v3469_v22, %v1992_v60  ;;  %v3706_v47 = vadd.f32 %v5474_v32, %v3705_v57 }
 0x25c   : > { %3677 = vst [vmem:[%s6753_s21 + $0xa8] sm:$0xff] %v5476_v6  ;;  %v4819_v61 = vpop.f32.mrb[22].mxu1  ;;  %v3747_v46 = vmul.f32 %v5476_v6, %v5476_v6 }
 0x25d   : > { %3676 = vst [vmem:[%s6753_s21 + $0xa0] sm:$0xff] %v5477_v59  ;;  %v3707_v58 = vadd.f32 %v5477_v59, %v3706_v47  ;;  %v3746_v12 = vmul.f32 %v5477_v59, %v5477_v59  ;;  %v3776_v7 = vadd.f32 %v3775_v56, %v3745_v42  ;;  %v5139_v15 = vpop.f32.mrb[22].mxu0  ;;  %v2002_v20 = vpop.f32.mrb[23].mxu1 }
 0x25e   : > { %v5478_v25 = vadd.f32 %v5139_v15, %v4819_v61  ;;  %v3479_v45 = vpop.f32.mrb[23].mxu0 }
 0x25f   : > { %v3777_v1 = vadd.f32 %v3776_v7, %v3746_v12  ;;  %v5479_v23 = vadd.f32 %v3479_v45, %v2002_v20  ;;  %v3708_v49 = vadd.f32 %v5476_v6, %v3707_v58 }
 0x260   : > { %3679 = vst [vmem:[%s6753_s21 + $0xb8] sm:$0xff] %v5478_v25  ;;  %v4822_v21 = vpop.f32.mrb[24].mxu1  ;;  %v3749_v8 = vmul.f32 %v5478_v25, %v5478_v25 }
 0x261   : > { %3678 = vst [vmem:[%s6753_s21 + $0xb0] sm:$0xff] %v5479_v23  ;;  %v3709_v24 = vadd.f32 %v5479_v23, %v3708_v49  ;;  %v3748_v26 = vmul.f32 %v5479_v23, %v5479_v23  ;;  %v3778_v4 = vadd.f32 %v3777_v1, %v3747_v46  ;;  %v5142_v38 = vpop.f32.mrb[24].mxu0  ;;  %v2012_v11 = vpop.f32.mrb[25].mxu1 }
 0x262   : > { %v5480_v34 = vadd.f32 %v5142_v38, %v4822_v21  ;;  %v3489_v44 = vpop.f32.mrb[25].mxu0 }
 0x263   : > { %v3779_v63 = vadd.f32 %v3778_v4, %v3748_v26  ;;  %v5481_v54 = vadd.f32 %v3489_v44, %v2012_v11  ;;  %v3710_v43 = vadd.f32 %v5478_v25, %v3709_v24 }
 0x264   : > { %3681 = vst [vmem:[%s6753_s21 + $0xc8] sm:$0xff] %v5480_v34  ;;  %v4825_v48 = vpop.f32.mrb[26].mxu1  ;;  %v3751_v52 = vmul.f32 %v5480_v34, %v5480_v34 }
 0x265   : > { %3680 = vst [vmem:[%s6753_s21 + $0xc0] sm:$0xff] %v5481_v54  ;;  %v3711_v27 = vadd.f32 %v5481_v54, %v3710_v43  ;;  %v3750_v2 = vmul.f32 %v5481_v54, %v5481_v54  ;;  %v3780_v51 = vadd.f32 %v3779_v63, %v3749_v8  ;;  %v5145_v37 = vpop.f32.mrb[26].mxu0  ;;  %v2022_v50 = vpop.f32.mrb[27].mxu1 }
 0x266   : > { %v5482_v30 = vadd.f32 %v5145_v37, %v4825_v48  ;;  %v3499_v31 = vpop.f32.mrb[27].mxu0 }
 0x267   : > { %v3781_v19 = vadd.f32 %v3780_v51, %v3750_v2  ;;  %v5483_v41 = vadd.f32 %v3499_v31, %v2022_v50  ;;  %v3712_v62 = vadd.f32 %v5480_v34, %v3711_v27 }
 0x268   : > { %3683 = vst [vmem:[%s6753_s21 + $0xd8] sm:$0xff] %v5482_v30  ;;  %v4828_v36 = vpop.f32.mrb[28].mxu1  ;;  %v3753_v17 = vmul.f32 %v5482_v30, %v5482_v30 }
 0x269   : > { %3682 = vst [vmem:[%s6753_s21 + $0xd0] sm:$0xff] %v5483_v41  ;;  %v3713_v18 = vadd.f32 %v5483_v41, %v3712_v62  ;;  %v3752_v3 = vmul.f32 %v5483_v41, %v5483_v41  ;;  %v3782_v10 = vadd.f32 %v3781_v19, %v3751_v52  ;;  %v5148_v13 = vpop.f32.mrb[28].mxu0  ;;  %v2032_v14 = vpop.f32.mrb[29].mxu1 }
 0x26a   : > { %v5484_v16 = vadd.f32 %v5148_v13, %v4828_v36  ;;  %v3509_v55 = vpop.f32.mrb[29].mxu0 }
 0x26b   : > { %v3783_v28 = vadd.f32 %v3782_v10, %v3752_v3  ;;  %v5485_v32 = vadd.f32 %v3509_v55, %v2032_v14  ;;  %v3714_v35 = vadd.f32 %v5482_v30, %v3713_v18 }
 0x26c   : > { %3685 = vst [vmem:[%s6753_s21 + $0xe8] sm:$0xff] %v5484_v16  ;;  %v4831_v39 = vpop.f32.mrb[30].mxu1  ;;  %v3755_v53 = vmul.f32 %v5484_v16, %v5484_v16 }
 0x26d   : > { %3684 = vst [vmem:[%s6753_s21 + $0xe0] sm:$0xff] %v5485_v32  ;;  %v3715_v5 = vadd.f32 %v5485_v32, %v3714_v35  ;;  %v3754_v29 = vmul.f32 %v5485_v32, %v5485_v32  ;;  %v3784_v33 = vadd.f32 %v3783_v28, %v3753_v17  ;;  %v5151_v9 = vpop.f32.mrb[30].mxu0  ;;  %v2042_v57 = vpop.f32.mrb[31].mxu1 }
 0x26e   : > { %v5486_v0 = vadd.f32 %v5151_v9, %v4831_v39  ;;  %v3519_v40 = vpop.f32.mrb[31].mxu0 }
 0x26f   : > { %v3785_v60 = vadd.f32 %v3784_v33, %v3754_v29  ;;  %v5487_v6 = vadd.f32 %v3519_v40, %v2042_v57  ;;  %v3716_v22 = vadd.f32 %v5484_v16, %v3715_v5 }
 0x270   : > { %3687 = vst [vmem:[%s6753_s21 + $0xf8] sm:$0xff] %v5486_v0 }
 0x271   : > { %3686 = vst [vmem:[%s6753_s21 + $0xf0] sm:$0xff] %v5487_v6  ;;  %v3717_v42 = vadd.f32 %v5487_v6, %v3716_v22  ;;  %v3756_v56 = vmul.f32 %v5487_v6, %v5487_v6  ;;  %v3786_v59 = vadd.f32 %v3785_v60, %v3755_v53 }
 0x272   : > { %5864 = shalt.err (!%p5861_p7)
}
 0x273   : > { %s5865_s6 = scalar_lea.hbm %s6795_s28, 4096  ;;  %s5869_s29 = scalar_lea.hbm %s6915_s2, 8192 }
 0x274   : > { %p5866_p9 = scmp.ne.s32.totalorder %s6795_s28, %s5865_s6  ;;  %p5870_p5 = scmp.lt.u32.totalorder %s6795_s28, %s6915_s2 }
 0x275   : > { %p5871_p11 = scmp.lt.u32.totalorder %s5869_s29, %s5865_s6  ;;  %p5873_p4 = scmp.lt.u32.totalorder %s5865_s6, %s6795_s28 }
 0x276   : > { %p5867_p1 = pnand %p5866_p9, %p6114_p12 }
 0x277   : > { %p5872_p2 = por %p5871_p11, %p5870_p5 }
 0x278   : > { %p5868_p0 = pneg %p5867_p1 }
 0x279   : > { %p5874_p6 = por %p5873_p4, %p5872_p2 }
 0x27b   : > { %p5875_p8 = pnand %p5874_p6, %p5868_p0 }
 0x27d   : > { %5878 = shalt.err (!%p5875_p8)
}
 0x27e   : > { %s5989_s13 = smov 128   ;;  %s5990_s10 = smov 8   ;;  %v3757_v47 = vmul.f32 %v5486_v0, %v5486_v0  ;;  %v3718_v61 = vadd.f32 %v5486_v0, %v3717_v42  ;;  %v3787_v58 = vadd.f32 %v3786_v59, %v3756_v56 }
 0x27f   : > { %5718 = dma.vmem_to_hbm [thread:$0]  (%p6114_p12), %s6797_s12, 4096, %s6795_s28, %s3797_s11, %s5989_s13, %s5989_s13, %s5990_s10  }
 0x280   : > { %v3719_v12 = vrot.slane %v3718_v61, 4  ;;  %v3788_v7 = vadd.f32 %v3787_v58, %v3757_v47  ;;  %s3801_s9 = sand.u32 1, %s6039_s19   ;;  %s3994_s26 = sshll.u32 %s6039_s19, 4 }
 0x281   : > { %s240_s25 = scalar_lea.vmem [#allocation10], %s6165_s14  ;;  %s246_s12 = scalar_lea.vmem [#allocation12], %s6165_s14 }
 0x282   : > { %v3720_v15 = vadd.f32 %v3719_v12, %v3718_v61  ;;  %v3789_v20 = vrot.slane %v3788_v7, 4  ;;  %s3834_s24 = sshll.u32 %s240_s25, 4  ;;  %s3847_s28 = sshll.u32 %s246_s12, 4  ;;  %s6836_s24 = int_to_ptr.vmem [resolvable:$true] %s3834_s24  ;;  %s6843_s28 = int_to_ptr.vmem [resolvable:$true] %s3847_s28 }
 0x283   : > { %s6834_s7 = scalar_lea.hbm %s6916_s3, %s3994_s26  ;;  %s6841_s29 = scalar_lea.hbm %s6917_s4, %s3994_s26 }
 0x284   : > { %v3721_v25 = vrot.slane %v3720_v15, 2  ;;  %v3790_v45 = vadd.f32 %v3789_v20, %v3788_v7  ;;  %s6845_s21 = scalar_lea.sflag [#allocation11], %s3801_s9  ;;  %s5879_s23 = scalar_lea.vmem %s6836_s24, 16 }
 0x285   : > { %p5880_p10 = scmp.ne.s32.totalorder %s6836_s24, %s5879_s23  ;;  %s5991_s13 = smov [#allocation10]  }
 0x286   : > { %v3722_v46 = vadd.f32 %v3721_v25, %v3720_v15  ;;  %v3791_v1 = vrot.slane %v3790_v45, 2  ;;  %s5883_s10 = sshll.u32 %s5991_s13, 4  ;;  %s5884_s10 = int_to_ptr.vmem [resolvable:$false] %s5883_s10 }
 0x287   : > { %p5881_p13 = pnand %p5880_p10, %p6114_p12  ;;  %s5885_s11 = scalar_lea.vmem %s5884_s10, 32 }
 0x288   : > { %v3792_v23 = vadd.f32 %v3791_v1, %v3790_v45  ;;  %v3723_v49 = vrot.slane %v3722_v46, 1  ;;  %p5886_p7 = scmp.lt.s32.totalorder %s6836_s24, %s5884_s10  ;;  %p5887_p9 = scmp.lt.s32.totalorder %s5885_s11, %s5879_s23 }
 0x289   : > { %p5882_p3 = pneg %p5881_p13 }
 0x28a   : > { %v3724_v21 = vadd.f32 %v3723_v49, %v3722_v46  ;;  %v3793_v24 = vrot.slane %v3792_v23, 1  ;;  %p5888_p1 = por %p5887_p9, %p5886_p7 }
 0x28c   : > { %3725 = vst [vmem:[%s240_s25] sm:$0x1] %v3724_v21  ;;  %v3794_v26 = vadd.f32 %v3793_v24, %v3792_v23  ;;  %p5889_p0 = pnand %p5888_p1, %p5882_p3 }
 0x28e   : > { %5892 = shalt.err (!%p5889_p0)
}
 0x28f   : > { %s5893_s9 = scalar_lea.hbm %s6834_s7, 16  ;;  %s5897_s6 = scalar_lea.hbm %s6916_s3, 32 }
 0x290   : > { %p5894_p5 = scmp.ne.s32.totalorder %s6834_s7, %s5893_s9  ;;  %p5898_p4 = scmp.lt.u32.totalorder %s6834_s7, %s6916_s3 }
 0x291   : > { %p5899_p6 = scmp.lt.u32.totalorder %s5897_s6, %s5893_s9  ;;  %p5901_p10 = scmp.lt.u32.totalorder %s5893_s9, %s6834_s7 }
 0x292   : > { %p5895_p11 = pnand %p5894_p5, %p6114_p12 }
 0x293   : > { %p5900_p8 = por %p5899_p6, %p5898_p4 }
 0x294   : > { %p5896_p2 = pneg %p5895_p11 }
 0x295   : > { %p5902_p13 = por %p5901_p10, %p5900_p8 }
 0x297   : > { %p5903_p3 = pnand %p5902_p13, %p5896_p2 }
 0x299   : > { %5906 = shalt.err (!%p5903_p3)
}
 0x29a   : > { %5719 = dma.vmem_to_hbm [thread:$0]  (%p6114_p12), %s6836_s24, 16, %s6834_s7, %s6845_s21   ;;  %3795 = vst [vmem:[%s246_s12] sm:$0x1] %v3794_v26 }
 0x29b   : > { %s5907_s23 = scalar_lea.vmem %s6843_s28, 16  ;;  %s5992_s13 = smov [#allocation12]  }
 0x29c   : > { %p5908_p7 = scmp.ne.s32.totalorder %s6843_s28, %s5907_s23  ;;  %s5911_s10 = sshll.u32 %s5992_s13, 4  ;;  %s5912_s10 = int_to_ptr.vmem [resolvable:$false] %s5911_s10 }
 0x29d   : > { %s5913_s11 = scalar_lea.vmem %s5912_s10, 32  ;;  %p5914_p0 = scmp.lt.s32.totalorder %s6843_s28, %s5912_s10 }
 0x29e   : > { %p5909_p9 = pnand %p5908_p7, %p6114_p12  ;;  %p5915_p5 = scmp.lt.s32.totalorder %s5913_s11, %s5907_s23 }
 0x2a0   : > { %p5910_p1 = pneg %p5909_p9  ;;  %p5916_p11 = por %p5915_p5, %p5914_p0 }
 0x2a2   : > { %p5917_p2 = pnand %p5916_p11, %p5910_p1 }
 0x2a4   : > { %5920 = shalt.err (!%p5917_p2)
}
 0x2a5   : > { %s5921_s14 = scalar_lea.hbm %s6841_s29, 16  ;;  %s5925_s7 = scalar_lea.hbm %s6917_s4, 32 }
 0x2a6   : > { %p5922_p4 = scmp.ne.s32.totalorder %s6841_s29, %s5921_s14  ;;  %p5926_p10 = scmp.lt.u32.totalorder %s6841_s29, %s6917_s4 }
 0x2a7   : > { %p5927_p13 = scmp.lt.u32.totalorder %s5925_s7, %s5921_s14  ;;  %p5929_p7 = scmp.lt.u32.totalorder %s5921_s14, %s6841_s29 }
 0x2a8   : > { %p5923_p6 = pnand %p5922_p4, %p6114_p12 }
 0x2a9   : > { %p5928_p3 = por %p5927_p13, %p5926_p10 }
 0x2aa   : > { %p5924_p8 = pneg %p5923_p6 }
 0x2ab   : > { %p5930_p9 = por %p5929_p7, %p5928_p3 }
 0x2ad   : > { %p5931_p1 = pnand %p5930_p9, %p5924_p8 }
 0x2af   : > { %5934 = shalt.err (!%p5931_p1)
}
 0x2b0   : > { %5720 = dma.vmem_to_hbm [thread:$0]  (%p6114_p12), %s6843_s28, 16, %s6841_s29, %s6845_s21  }
 0x2b1 PF: > { %s3859_s25 = sand.u32 1, %s5969_s15   ;;  %p7045_p0 = scmp.ne.s32.totalorder %s6965_s22, 0 }
 0x2b2   : > { %p7046_p5 = scmp.ge.s32.totalorder %s5981_s18, 2  ;;  %s3860_s6 = scalar_lea.sflag [#allocation6], %s3859_s25 }
 0x2b4   : > { %p5733_p11 = pnand %p7046_p5, %p7045_p0 }
 0x2b6   : > { %5960 = dma.done.wait (!%p5733_p11), %s3860_s6, 4096  }
 0x2b7   : > { %5962 = vsyncadd (!%p5733_p11), %s3860_s6, 4294963200  ;;  %s3868_s19 = sand.u32 1, %s3980_s20  }
 0x2b8   : > { %s3869_s8 = scalar_lea.sflag [#allocation11], %s3868_s19 }
 0x2b9   : > { %5964 = dma.done.wait (!%p5733_p11), %s3869_s8, 32  }
 0x2ba   : > { %5966 = vsyncadd (!%p5733_p11), %s3869_s8, 4294967264  ;;  %p22_p12 = scmp.ge.s32.totalorder %s6076_s27, 4   ;;  %s7047_s15 = smov %s5973_s16 }
 0x2bb   : > { %s7048_s16 = smov %s5977_s17  ;;  %s7049_s17 = smov %s6110_s30 }
 0x2bc   : > { %s7050_s18 = smov %s6076_s27  ;;  %24 = sbr.rel (!%p22_p12) target bundleno = 8 (0x8), region = 111 }
 0x2c3   :  { %3881 = vsyncpa [#allocation5], 1 }
 0x2c4   :  { %3883 = vsyncpa [#allocation5 + $0x1], 1 }
 0x2c5   :  { %3884 = vsyncpa [#allocation8], 1 }
 0x2c6   :  { %3885 = vsyncpa [#allocation6], 1 }
 0x2c7   :  { %3887 = vsyncpa [#allocation6 + $0x1], 1 }
 0x2c8   :  { %3888 = vsyncpa [#allocation11], 1 }
 0x2c9   :  { %3890 = vsyncpa [#allocation11 + $0x1], 1 }

</bundles_post_ra>
